<compile_context>
chip_gen: v7x
topology: tpu7x:2x2x1
jax: 0.10.0
libtpu: 0.0.40
codegen_flags: <defaults>
</compile_context>

<pallas_src>
import numpy as np
import jax
import jax.numpy as jnp
from jax import lax
from jax.experimental import pallas as pl
from jax.experimental.pallas import tpu as pltpu

N_COLORS = 256
MAX_TILE = 8192   # pass-2 spatial lanes per grid step (multiple of 128)
MAX_ROWS = 4096   # pass-1 rows per grid step: (4096, 128) f32 = 2 MiB block


def _round_up(n, m):
    return ((n + m - 1) // m) * m


def _pick_tile(hwp):
    """Largest lane tile <= MAX_TILE, preferring an exact divisor of hwp
    (>= 4224 lanes) so pass 2 writes no padded output columns."""
    if hwp <= MAX_TILE:
        return hwp
    for k in range(MAX_TILE // 128, MAX_TILE // 256, -1):   # 8192 .. 4224
        t = k * 128
        if hwp % t == 0:
            return t
    return MAX_TILE


def _jet_cmap_float() -> np.ndarray:
    """Deterministic in-script reconstruction of matplotlib's 'jet' colormap
    (piecewise-linear segment data), 256 x 3 float64 in [0, 1]."""
    x = np.linspace(0.0, 1.0, N_COLORS)
    red = np.interp(x, [0.0, 0.35, 0.66, 0.89, 1.0], [0.0, 0.0, 1.0, 1.0, 0.5])
    green = np.interp(x, [0.0, 0.125, 0.375, 0.64, 0.91, 1.0],
                      [0.0, 0.0, 1.0, 1.0, 0.0, 0.0])
    blue = np.interp(x, [0.0, 0.11, 0.34, 0.65, 1.0], [0.5, 1.0, 1.0, 0.0, 0.0])
    return np.stack([red, green, blue], axis=1)


def _make_minmax_kernel(r1, rows, need_mask):
    """Pass 1: sublane-dense (r1, 128) f32 blocks -> per-lane (1, 128)
    min/max partials (cross-lane reduce deferred to pass 2)."""

    def kernel(x_ref, mn_ref, mx_ref):
        t = pl.program_id(1)

        @pl.when(t == 0)
        def _():
            mn_ref[...] = jnp.full_like(mn_ref, jnp.inf)
            mx_ref[...] = jnp.full_like(mx_ref, -jnp.inf)

        def accumulate(xmn, xmx):
            mn_ref[...] = jnp.minimum(mn_ref[...],
                                      jnp.min(xmn, axis=0, keepdims=True))
            mx_ref[...] = jnp.maximum(mx_ref[...],
                                      jnp.max(xmx, axis=0, keepdims=True))

        if need_mask:
            last = pl.num_programs(1) - 1

            @pl.when(t < last)
            def _():
                x = x_ref[...]
                accumulate(x, x)

            @pl.when(t == last)
            def _():
                # ragged tail: rows past `rows` hold unspecified data -> mask.
                x = x_ref[...]
                rid = t * r1 + lax.broadcasted_iota(jnp.int32, (r1, 128), 0)
                valid = rid < rows
                accumulate(jnp.where(valid, x, jnp.inf),
                           jnp.where(valid, x, -jnp.inf))
        else:
            x = x_ref[...]
            accumulate(x, x)

    return kernel


def _colorize_kernel(cmap_ref, iota_ref, mn_ref, mx_ref, x_ref, o_ref):
    # cmap_ref: (3, 256) bf16 ; iota_ref: (256, T) bf16 (constant index -> one fetch)
    # mn_ref / mx_ref: (1, 128) f32 per-lane partials ; x_ref: (1, T) f32
    # o_ref: (3, T) uint8
    cmin = jnp.min(mn_ref[...])                         # finish the lane reduce
    cmax = jnp.max(mx_ref[...])
    denom = jnp.maximum(cmax - cmin, jnp.float32(1e-5))

    normalized = (x_ref[...] - cmin) / denom            # (1, T) f32, matches torch
    # torch .long() truncates; values >= 0 after clip so floor == trunc.
    idx = jnp.floor(jnp.clip(normalized * 255.0, 0.0, 255.0))   # integer-valued f32
    idx_bf = idx.astype(jnp.bfloat16)                   # 0..255 exact in bf16

    # packed-bf16 one-hot (exact 0/1 weights), half the VALU of an int32 build
    onehot = (iota_ref[...] == idx_bf).astype(jnp.bfloat16)     # (256, T)

    # (3, 256) @ (256, T) -> (3, T), f32 MXU accumulation (exact: integer LUT)
    rgb = jnp.dot(cmap_ref[...], onehot, preferred_element_type=jnp.float32)
    o_ref[...] = rgb.astype(jnp.int32).astype(jnp.uint8)


@jax.jit
def color_map_forward(x, cmap_u8):
    """x: (B, 1, H, W) float; cmap_u8: (256, 3) uint8. Returns (B, 3, H, W) uint8."""
    b, c, h, w = x.shape
    assert c == 1, "ColorMap expects second dimension of size 1"
    hw = h * w

    # One shared edge-padded f32 buffer; padding to a multiple of 1024 keeps the
    # (rows, 128) pass-1 view sublane-aligned (rows % 8 == 0) and never changes
    # the min/max (edge replication).  Both passes view the same buffer.
    hwp = _round_up(hw, 1024)
    x_flat = x.reshape(b, hw)
    if x_flat.dtype != jnp.float32:
        x_flat = x_flat.astype(jnp.float32)
    if hwp != hw:
        x_flat = jnp.pad(x_flat, ((0, 0), (0, hwp - hw)), mode="edge")

    # ---- pass 1: per-batch per-lane min / max partials --------------------
    rows = hwp // 128
    r1 = min(MAX_ROWS, rows)
    n1 = -(-rows // r1)
    need_mask = (rows % r1) != 0

    x2d = x_flat.reshape(b, rows, 128)                  # free view
    mn, mx = pl.pallas_call(
        _make_minmax_kernel(r1, rows, need_mask),
        out_shape=(jax.ShapeDtypeStruct((b, 1, 128), jnp.float32),
                   jax.ShapeDtypeStruct((b, 1, 128), jnp.float32)),
        grid=(b, n1),
        in_specs=[pl.BlockSpec((None, r1, 128), lambda i, t: (i, t, 0))],
        out_specs=(pl.BlockSpec((None, 1, 128), lambda i, t: (i, 0, 0)),
                   pl.BlockSpec((None, 1, 128), lambda i, t: (i, 0, 0))),
        compiler_params=pltpu.CompilerParams(
            dimension_semantics=("parallel", "arbitrary"),
            vmem_limit_bytes=32 * 1024 * 1024),
    )(x2d)

    # ---- pass 2: normalize + LUT gather, channel-major uint8 output -------
    tile = _pick_tile(hwp)
    num_tiles = -(-hwp // tile)
    hwpt = num_tiles * tile

    x1d = x_flat.reshape(b, 1, hwp)                     # free view
    cmap_bf = cmap_u8.astype(jnp.bfloat16).T            # (3, 256), exact ints
    iota_bf = lax.broadcasted_iota(
        jnp.float32, (N_COLORS, tile), 0).astype(jnp.bfloat16)   # (256, T)

    flops = 2 * 3 * N_COLORS * b * hwpt
    bytes_accessed = (4 * b * hwp             # x read
                      + 3 * b * hwpt          # uint8 output write
                      + 2 * N_COLORS * tile   # bf16 iota (fetched once)
                      + 2 * 3 * N_COLORS      # cmap
                      + 2 * 4 * b * 128)      # min / max partials

    out = pl.pallas_call(
        _colorize_kernel,
        out_shape=jax.ShapeDtypeStruct((3, b * hwpt), jnp.uint8),
        grid=(b, num_tiles),
        in_specs=[
            pl.BlockSpec((3, N_COLORS), lambda i, t: (0, 0)),       # cmap
            pl.BlockSpec((N_COLORS, tile), lambda i, t: (0, 0)),    # iota (const)
            pl.BlockSpec((None, 1, 128), lambda i, t: (i, 0, 0)),   # min partial
            pl.BlockSpec((None, 1, 128), lambda i, t: (i, 0, 0)),   # max partial
            pl.BlockSpec((None, 1, tile), lambda i, t: (i, 0, t)),  # x tile
        ],
        out_specs=pl.BlockSpec((3, tile),
                               lambda i, t: (0, i * num_tiles + t)),
        compiler_params=pltpu.CompilerParams(
            dimension_semantics=("parallel", "parallel"),
            vmem_limit_bytes=48 * 1024 * 1024),
        cost_estimate=pl.CostEstimate(flops=flops, transcendentals=0,
                                      bytes_accessed=bytes_accessed),
    )(cmap_bf, iota_bf, mn, mx, x1d)

    # out is (3, B*HWpt) channel-major -> exactly PyTorch's
    # z.transpose(0,1).contiguous().view(b, 3, h, w) after dropping padding.
    out3 = out.reshape(3, b, hwpt)
    if hwpt != hw:
        out3 = out3[:, :, :hw]
    return out3.reshape(b, 3, h, w)


if __name__ == "__main__":
    # deterministic "parameter" init: jet colormap table, quantized to uint8
    cmap_f = _jet_cmap_float()                                 # (256, 3)
    cmap_u8 = jnp.asarray((255.0 * cmap_f).astype(np.uint8))   # matches .byte()

    # small example input consistent with forward(): (B, 1, H, W) float32
    key = jax.random.PRNGKey(0)
    x = jax.random.normal(key, (2, 1, 16, 16), dtype=jnp.float32)

    y = color_map_forward(x, cmap_u8)
    y = jax.block_until_ready(y)

    # host-side reference of the same semantics (float32 throughout)
    xn = np.asarray(x)
    b, c, h, w = xn.shape
    hw = h * w
    flat = xn.reshape(b, hw).astype(np.float32)
    cmin = flat.min(axis=1, keepdims=True)
    cmax = flat.max(axis=1, keepdims=True)
    denom = np.maximum(cmax - cmin, np.float32(1e-5))
    norm = (flat - cmin) / denom
    idx = np.clip(norm * np.float32(255.0), 0.0, 255.0).astype(np.int64)
    z = np.asarray(cmap_u8)[idx.reshape(-1)]                   # (B*H*W, 3)
    ref = z.T.reshape(b, 3, h, w).astype(np.uint8)             # transpose+view

    assert y.shape == (2, 3, 16, 16) and y.dtype == jnp.uint8
    assert np.array_equal(np.asarray(y), ref)

    print("KERNEL_OK")
</pallas_src>

<mosaic_0001>
module attributes {stable_mosaic.version = 11 : i64} {
  func.func @kernel(%arg0: i32, %arg1: i32, %arg2: memref<1x8x128xf32, #tpu.memory_space<vmem>>, %arg3: memref<1x1x128xf32, #tpu.memory_space<vmem>>, %arg4: memref<1x1x128xf32, #tpu.memory_space<vmem>>) attributes {dimension_semantics = [#tpu.dimension_semantics<parallel>, #tpu.dimension_semantics<arbitrary>], iteration_bounds = array<i64: 2, 1>, scalar_prefetch = 0 : i64, scratch_operands = 0 : i64, tpu.core_type = #tpu.core_type<tc>, window_params = [{transform_indices = @transform_0, window_bounds = array<i64: 1, 8, 128>}, {transform_indices = @transform_1, window_bounds = array<i64: 1, 1, 128>}, {transform_indices = @transform_2, window_bounds = array<i64: 1, 1, 128>}]} {
    %c0_i32 = arith.constant 0 : i32
    %0 = arith.cmpi eq, %arg1, %c0_i32 : i32
    %1 = arith.extui %0 : i1 to i32
    %c0_i32_0 = arith.constant 0 : i32
    %2 = arith.cmpi ne, %1, %c0_i32_0 : i32
    scf.if %2 {
      %cst_16 = arith.constant 0x7F800000 : f32
      %21 = vector.broadcast %cst_16 : f32 to vector<1x128xf32>
      %c0_17 = arith.constant 0 : index
      %c0_18 = arith.constant 0 : index
      %c0_19 = arith.constant 0 : index
      %22 = vector.load %arg3[%c0_17, %c0_18, %c0_19] : memref<1x1x128xf32, #tpu.memory_space<vmem>>, vector<1x1x128xf32>
      %23 = vector.shape_cast %22 : vector<1x1x128xf32> to vector<1x128xf32>
      %24 = vector.shape_cast %21 : vector<1x128xf32> to vector<1x1x128xf32>
      tpu.vector_store %arg3[%c0_17, %c0_18, %c0_19], %24 {strides = array<i32>} : memref<1x1x128xf32, #tpu.memory_space<vmem>>, vector<1x1x128xf32>,
      %cst_20 = arith.constant 0xFF800000 : f32
      %25 = vector.broadcast %cst_20 : f32 to vector<1x128xf32>
      %c0_21 = arith.constant 0 : index
      %c0_22 = arith.constant 0 : index
      %c0_23 = arith.constant 0 : index
      %26 = vector.load %arg4[%c0_21, %c0_22, %c0_23] : memref<1x1x128xf32, #tpu.memory_space<vmem>>, vector<1x1x128xf32>
      %27 = vector.shape_cast %26 : vector<1x1x128xf32> to vector<1x128xf32>
      %28 = vector.shape_cast %25 : vector<1x128xf32> to vector<1x1x128xf32>
      tpu.vector_store %arg4[%c0_21, %c0_22, %c0_23], %28 {strides = array<i32>} : memref<1x1x128xf32, #tpu.memory_space<vmem>>, vector<1x1x128xf32>,
    } else {
    }
    %c0 = arith.constant 0 : index
    %c0_1 = arith.constant 0 : index
    %c0_2 = arith.constant 0 : index
    %3 = vector.load %arg2[%c0, %c0_1, %c0_2] : memref<1x8x128xf32, #tpu.memory_space<vmem>>, vector<1x8x128xf32>
    %4 = vector.shape_cast %3 : vector<1x8x128xf32> to vector<8x128xf32>
    %c0_3 = arith.constant 0 : index
    %c0_4 = arith.constant 0 : index
    %c0_5 = arith.constant 0 : index
    %5 = vector.load %arg3[%c0_3, %c0_4, %c0_5] : memref<1x1x128xf32, #tpu.memory_space<vmem>>, vector<1x1x128xf32>
    %6 = vector.shape_cast %5 : vector<1x1x128xf32> to vector<1x128xf32>
    %cst = arith.constant dense<0x7F800000> : vector<128xf32>
    %7 = vector.multi_reduction <minimumf>, %4, %cst [0] : vector<8x128xf32> to vector<128xf32>
    %8 = vector.shape_cast %7 : vector<128xf32> to vector<1x128xf32>
    %9 = arith.minimumf %6, %8 : vector<1x128xf32>
    %c0_6 = arith.constant 0 : index
    %c0_7 = arith.constant 0 : index
    %c0_8 = arith.constant 0 : index
    %10 = vector.load %arg3[%c0_6, %c0_7, %c0_8] : memref<1x1x128xf32, #tpu.memory_space<vmem>>, vector<1x1x128xf32>
    %11 = vector.shape_cast %10 : vector<1x1x128xf32> to vector<1x128xf32>
    %12 = vector.shape_cast %9 : vector<1x128xf32> to vector<1x1x128xf32>
    tpu.vector_store %arg3[%c0_6, %c0_7, %c0_8], %12 {strides = array<i32>} : memref<1x1x128xf32, #tpu.memory_space<vmem>>, vector<1x1x128xf32>,
    %c0_9 = arith.constant 0 : index
    %c0_10 = arith.constant 0 : index
    %c0_11 = arith.constant 0 : index
    %13 = vector.load %arg4[%c0_9, %c0_10, %c0_11] : memref<1x1x128xf32, #tpu.memory_space<vmem>>, vector<1x1x128xf32>
    %14 = vector.shape_cast %13 : vector<1x1x128xf32> to vector<1x128xf32>
    %cst_12 = arith.constant dense<0xFF800000> : vector<128xf32>
    %15 = vector.multi_reduction <maximumf>, %4, %cst_12 [0] : vector<8x128xf32> to vector<128xf32>
    %16 = vector.shape_cast %15 : vector<128xf32> to vector<1x128xf32>
    %17 = arith.maximumf %14, %16 : vector<1x128xf32>
    %c0_13 = arith.constant 0 : index
    %c0_14 = arith.constant 0 : index
    %c0_15 = arith.constant 0 : index
    %18 = vector.load %arg4[%c0_13, %c0_14, %c0_15] : memref<1x1x128xf32, #tpu.memory_space<vmem>>, vector<1x1x128xf32>
    %19 = vector.shape_cast %18 : vector<1x1x128xf32> to vector<1x128xf32>
    %20 = vector.shape_cast %17 : vector<1x128xf32> to vector<1x1x128xf32>
    tpu.vector_store %arg4[%c0_13, %c0_14, %c0_15], %20 {strides = array<i32>} : memref<1x1x128xf32, #tpu.memory_space<vmem>>, vector<1x1x128xf32>,
    return
  }
  func.func @transform_0(%arg0: i32, %arg1: i32) -> (i32, i32, i32) {
    %c0_i32 = arith.constant 0 : i32
    %c0_i32_0 = arith.constant 0 : i32
    return %arg0, %arg1, %c0_i32 : i32, i32, i32
  }
  func.func @transform_1(%arg0: i32, %arg1: i32) -> (i32, i32, i32) {
    %c0_i32 = arith.constant 0 : i32
    %c0_i32_0 = arith.constant 0 : i32
    %c0_i32_1 = arith.constant 0 : i32
    return %arg0, %c0_i32, %c0_i32_0 : i32, i32, i32
  }
  func.func @transform_2(%arg0: i32, %arg1: i32) -> (i32, i32, i32) {
    %c0_i32 = arith.constant 0 : i32
    %c0_i32_0 = arith.constant 0 : i32
    %c0_i32_1 = arith.constant 0 : i32
    return %arg0, %c0_i32, %c0_i32_0 : i32, i32, i32
  }
}

module attributes {stable_mosaic.version = 11 : i64} {
  func.func @_colorize_kernel(%arg0: i32, %arg1: i32, %arg2: memref<3x256xbf16, #tpu.memory_space<vmem>>, %arg3: memref<256x1024xbf16, #tpu.memory_space<vmem>>, %arg4: memref<1x1x128xf32, #tpu.memory_space<vmem>>, %arg5: memref<1x1x128xf32, #tpu.memory_space<vmem>>, %arg6: memref<1x1x1024xf32, #tpu.memory_space<vmem>>, %arg7: memref<3x1024xi8, #tpu.memory_space<vmem>>) attributes {dimension_semantics = [#tpu.dimension_semantics<parallel>, #tpu.dimension_semantics<parallel>], iteration_bounds = array<i64: 2, 1>, scalar_prefetch = 0 : i64, scratch_operands = 0 : i64, tpu.core_type = #tpu.core_type<tc>, window_params = [{pipeline_mode = #tpu.pipeline_mode<synchronous>, transform_indices = @transform_0, window_bounds = array<i64: 3, 256>}, {pipeline_mode = #tpu.pipeline_mode<synchronous>, transform_indices = @transform_1, window_bounds = array<i64: 256, 1024>}, {transform_indices = @transform_2, window_bounds = array<i64: 1, 1, 128>}, {transform_indices = @transform_3, window_bounds = array<i64: 1, 1, 128>}, {transform_indices = @transform_4, window_bounds = array<i64: 1, 1, 1024>}, {transform_indices = @transform_5, window_bounds = array<i64: 3, 1024>}]} {
    %c0 = arith.constant 0 : index
    %c0_0 = arith.constant 0 : index
    %c0_1 = arith.constant 0 : index
    %0 = vector.load %arg4[%c0, %c0_0, %c0_1] : memref<1x1x128xf32, #tpu.memory_space<vmem>>, vector<1x1x128xf32>
    %1 = vector.shape_cast %0 : vector<1x1x128xf32> to vector<1x128xf32>
    %2 = vector.shape_cast %1 : vector<1x128xf32> to vector<1x1x128xf32>
    %cst = arith.constant dense<0x7F800000> : vector<1xf32>
    %3 = vector.multi_reduction <minimumf>, %2, %cst [1, 2] : vector<1x1x128xf32> to vector<1xf32>
    %4 = vector.shape_cast %3 : vector<1xf32> to vector<1x1x1xf32>
    %5 = vector.extract %4[0, 0, 0] : f32 from vector<1x1x1xf32>
    %c0_2 = arith.constant 0 : index
    %c0_3 = arith.constant 0 : index
    %c0_4 = arith.constant 0 : index
    %6 = vector.load %arg5[%c0_2, %c0_3, %c0_4] : memref<1x1x128xf32, #tpu.memory_space<vmem>>, vector<1x1x128xf32>
    %7 = vector.shape_cast %6 : vector<1x1x128xf32> to vector<1x128xf32>
    %8 = vector.shape_cast %7 : vector<1x128xf32> to vector<1x1x128xf32>
    %cst_5 = arith.constant dense<0xFF800000> : vector<1xf32>
    %9 = vector.multi_reduction <maximumf>, %8, %cst_5 [1, 2] : vector<1x1x128xf32> to vector<1xf32>
    %10 = vector.shape_cast %9 : vector<1xf32> to vector<1x1x1xf32>
    %11 = vector.extract %10[0, 0, 0] : f32 from vector<1x1x1xf32>
    %12 = arith.subf %11, %5 : f32
    %cst_6 = arith.constant 9.99999974E-6 : f32
    %13 = arith.maximumf %12, %cst_6 : f32
    %c0_7 = arith.constant 0 : index
    %c0_8 = arith.constant 0 : index
    %c0_9 = arith.constant 0 : index
    %14 = vector.load %arg6[%c0_7, %c0_8, %c0_9] : memref<1x1x1024xf32, #tpu.memory_space<vmem>>, vector<1x1x1024xf32>
    %15 = vector.shape_cast %14 : vector<1x1x1024xf32> to vector<1x1024xf32>
    %16 = vector.broadcast %5 : f32 to vector<1x1024xf32>
    %17 = arith.subf %15, %16 : vector<1x1024xf32>
    %18 = vector.broadcast %13 : f32 to vector<1x1024xf32>
    %19 = arith.divf %17, %18 : vector<1x1024xf32>
    %cst_10 = arith.constant 2.550000e+02 : f32
    %20 = vector.broadcast %cst_10 : f32 to vector<1x1024xf32>
    %21 = arith.mulf %19, %20 : vector<1x1024xf32>
    %cst_11 = arith.constant 0.000000e+00 : f32
    %cst_12 = arith.constant 2.550000e+02 : f32
    %22 = vector.broadcast %cst_11 : f32 to vector<1x1024xf32>
    %23 = arith.maximumf %22, %21 : vector<1x1024xf32>
    %24 = vector.broadcast %cst_12 : f32 to vector<1x1024xf32>
    %25 = arith.minimumf %24, %23 : vector<1x1024xf32>
    %26 = math.floor %25 : vector<1x1024xf32>
    %27 = arith.truncf %26 : vector<1x1024xf32> to vector<1x1024xbf16>
    %c0_13 = arith.constant 0 : index
    %c0_14 = arith.constant 0 : index
    %28 = vector.load %arg3[%c0_13, %c0_14] : memref<256x1024xbf16, #tpu.memory_space<vmem>>, vector<256x1024xbf16>
    %29 = vector.broadcast %27 : vector<1x1024xbf16> to vector<256x1024xbf16>
    %30 = arith.cmpf oeq, %28, %29 : vector<256x1024xbf16>
    %31 = arith.extui %30 : vector<256x1024xi1> to vector<256x1024xi32>
    %32 = arith.sitofp %31 : vector<256x1024xi32> to vector<256x1024xf32>
    %33 = arith.truncf %32 : vector<256x1024xf32> to vector<256x1024xbf16>
    %c0_15 = arith.constant 0 : index
    %c0_16 = arith.constant 0 : index
    %34 = vector.load %arg2[%c0_15, %c0_16] : memref<3x256xbf16, #tpu.memory_space<vmem>>, vector<3x256xbf16>
    %cst_17 = arith.constant dense<0.000000e+00> : vector<3x1024xf32>
    %35 = tpu.matmul %34, %33, %cst_17 {dimension_numbers = #tpu.dot_dimension_numbers<[1], [0], [0], [1], [0, 0, 1, 1], [], []>} : vector<3x256xbf16>, vector<256x1024xbf16>, vector<3x1024xf32> -> vector<3x1024xf32>
    %36 = arith.fptosi %35 : vector<3x1024xf32> to vector<3x1024xi32>
    %37 = arith.trunci %36 : vector<3x1024xi32> to vector<3x1024xi8>
    %c0_18 = arith.constant 0 : index
    %c0_19 = arith.constant 0 : index
    %38 = vector.load %arg7[%c0_18, %c0_19] : memref<3x1024xi8, #tpu.memory_space<vmem>>, vector<3x1024xi8>
    tpu.vector_store %arg7[%c0_18, %c0_19], %37 {strides = array<i32>} : memref<3x1024xi8, #tpu.memory_space<vmem>>, vector<3x1024xi8>,
    return
  }
  func.func @transform_0(%arg0: i32, %arg1: i32) -> (i32, i32) {
    %c0_i32 = arith.constant 0 : i32
    %c0_i32_0 = arith.constant 0 : i32
    %c0_i32_1 = arith.constant 0 : i32
    return %c0_i32, %c0_i32_0 : i32, i32
  }
  func.func @transform_1(%arg0: i32, %arg1: i32) -> (i32, i32) {
    %c0_i32 = arith.constant 0 : i32
    %c0_i32_0 = arith.constant 0 : i32
    %c0_i32_1 = arith.constant 0 : i32
    return %c0_i32, %c0_i32_0 : i32, i32
  }
  func.func @transform_2(%arg0: i32, %arg1: i32) -> (i32, i32, i32) {
    %c0_i32 = arith.constant 0 : i32
    %c0_i32_0 = arith.constant 0 : i32
    %c0_i32_1 = arith.constant 0 : i32
    return %arg0, %c0_i32, %c0_i32_0 : i32, i32, i32
  }
  func.func @transform_3(%arg0: i32, %arg1: i32) -> (i32, i32, i32) {
    %c0_i32 = arith.constant 0 : i32
    %c0_i32_0 = arith.constant 0 : i32
    %c0_i32_1 = arith.constant 0 : i32
    return %arg0, %c0_i32, %c0_i32_0 : i32, i32, i32
  }
  func.func @transform_4(%arg0: i32, %arg1: i32) -> (i32, i32, i32) {
    %c0_i32 = arith.constant 0 : i32
    %c0_i32_0 = arith.constant 0 : i32
    return %arg0, %c0_i32, %arg1 : i32, i32, i32
  }
  func.func @transform_5(%arg0: i32, %arg1: i32) -> (i32, i32) {
    %c1_i32 = arith.constant 1 : i32
    %0 = arith.muli %arg0, %c1_i32 : i32
    %1 = arith.addi %0, %arg1 : i32
    %c0_i32 = arith.constant 0 : i32
    %c0_i32_0 = arith.constant 0 : i32
    return %c0_i32, %1 : i32, i32
  }
}

</mosaic_0001>

<bundles_post_ra>
// kernel: color_map_forward.2
= control target key start
LH: loop header
LB: loop body
LE: loop exit
PB: predicated region body
PF: predicated region fallthrough
CT: control target
= control target key end

     0   :  { %s352_s9 = smov 0   ;;  %s354_s10 = smov 0   ;;  %s388_s0 = inlined_call_operand.vmem [shape: f32[2,8,128], index: 0, kind: input, shape index: {}]   ;;  %s389_s1 = inlined_call_operand.vmem [shape: f32[2,1,128], index: 1, kind: output, shape index: {0}]   ;;  %s390_s2 = inlined_call_operand.vmem [shape: f32[2,1,128], index: 2, kind: output, shape index: {1}]  }
   0x1   :  { %s356_s11 = smov 0  }
   0x2 LB: > { %s25_s12 = sadd.s32 1, %s329_s10  ;;  %p281_p0 = scmp.ge.s32.totalorder %s333_s11, 1  ;;  %s333_s11 = sphi %s356_s11, %s13_s11   ;;  %s329_s10 = sphi %s354_s10, %s392_s10   ;;  %s325_s9 = sphi %s352_s9, %s391_s9  }
   0x3   : > { %p27_p1 = scmp.ge.s32.totalorder %s25_s12, 2  ;;  %p131_p2 = scmp.lt.s32.totalorder %s333_s11, 3 }
   0x5   : > { %s394_s12 = smov (%p27_p1, %s25_s12), 0  ;;  %p132_p3 = pnand %p281_p0, %p131_p2 }
   0x6   : > { %p156_p4 = scmp.lt.s32.totalorder (!%p132_p3), %s325_s9, 1  ;;  %v335_v0 = vmov (!%p132_p3), inf   ;;  %v336_v2 = vmov (!%p132_p3), -inf  }
   0x7   : > { %135 = sbr.rel (%p132_p3) target bundleno = 33 (0x21), region = 24 }
   0xe   : > { %s396_s9 = smov (!%p156_p4, %s325_s9), 1 }
   0xf   : > { %s282_s13 = sshll.u32 %s396_s9, 3  ;;  %s165_s16 = scalar_lea.vmem %s389_s1, %s396_s9 }
  0x10   : > { %s162_s19 = scalar_lea.vmem %s388_s0, %s282_s13  ;;  %173 = vst [vmem:[%s165_s16] sm:$0x1] %v335_v0  ;;  %s168_s22 = scalar_lea.vmem %s390_s2, %s396_s9 }
  0x11   : > { %v175_v1 = vld [vmem:[%s162_s19] sm:$0xff]  ;;  %174 = vst [vmem:[%s168_s22] sm:$0x1] %v336_v2 }
  0x12   : > { %v177_v3 = vrot.slane %v175_v1, 4 }
  0x14   : > { %v178_v4 = vmin.f32 %v175_v1, %v177_v3  ;;  %v187_v5 = vmax.f32 %v175_v1, %v177_v3 }
  0x16   : > { %v179_v6 = vrot.slane %v178_v4, 2  ;;  %v188_v7 = vrot.slane %v187_v5, 2 }
  0x17   : > { %v176_v12 = vld [vmem:[%s165_s16] sm:$0x1] }
  0x18   : > { %v180_v8 = vmin.f32 %v178_v4, %v179_v6  ;;  %v189_v9 = vmax.f32 %v187_v5, %v188_v7  ;;  %v185_v13 = vld [vmem:[%s168_s22] sm:$0x1] }
  0x1a   : > { %v181_v10 = vrot.slane %v180_v8, 1  ;;  %v190_v11 = vrot.slane %v189_v9, 1 }
  0x1c   : > { %v182_v14 = vmin.f32 %v180_v8, %v181_v10  ;;  %v191_v15 = vmax.f32 %v189_v9, %v190_v11 }
  0x1e   : > { %v183_v16 = vmin.f32 %v176_v12, %v182_v14  ;;  %v192_v17 = vmax.f32 %v185_v13, %v191_v15 }
  0x20   : > { %184 = vst [vmem:[%s165_s16] sm:$0x1] %v183_v16  ;;  %193 = vst [vmem:[%s168_s22] sm:$0x1] %v192_v17 }
  0x21 PF: > { %s13_s11 = sadd.s32 1, %s333_s11   ;;  %s391_s9 = smov %s329_s10 }
  0x22   : > { %p10_p5 = scmp.ge.s32.totalorder %s13_s11, 4   ;;  %s392_s10 = smov %s394_s12 }
  0x24   :  { %12 = sbr.rel (!%p10_p5) target bundleno = 2 (0x2), region = 70 }

// kernel: color_map_forward.3
= control target key start
LH: loop header
LB: loop body
LE: loop exit
PB: predicated region body
PF: predicated region fallthrough
CT: control target
= control target key end

     0   :  { %s2990_s18 = smov 0   ;;  %s2992_s19 = smov 0   ;;  %s4702_s0 = inlined_call_operand.vmem [shape: bf16[3,256], index: 0, kind: input, shape index: {}]   ;;  %s4703_s1 = inlined_call_operand.vmem [shape: bf16[256,1024], index: 1, kind: input, shape index: {}]   ;;  %s4704_s2 = inlined_call_operand.vmem [shape: f32[2,1,128], index: 2, kind: input, shape index: {}]   ;;  %s4705_s3 = inlined_call_operand.vmem [shape: f32[2,1,128], index: 3, kind: input, shape index: {}]   ;;  %s4706_s4 = inlined_call_operand.vmem [shape: f32[2,1,1024], index: 4, kind: input, shape index: {}]   ;;  %s4707_s5 = inlined_call_operand.vmem [shape: u8[3,2048], index: 5, kind: output, shape index: {}]  }
   0x1   :  { %s2994_s20 = smov 0  }
   0x2 LB: > { %s27_s21 = sadd.s32 1, %s2950_s19  ;;  %p2354_p0 = scmp.ge.s32.totalorder %s2954_s20, 1  ;;  %s2954_s20 = sphi %s2994_s20, %s15_s20   ;;  %s2950_s19 = sphi %s2992_s19, %s4989_s19   ;;  %s2946_s18 = sphi %s2990_s18, %s4988_s18  }
   0x3   : > { %p29_p1 = scmp.ge.s32.totalorder %s27_s21, 2  ;;  %p223_p2 = scmp.lt.s32.totalorder %s2954_s20, 3 }
   0x5   : > { %s4991_s21 = smov (%p29_p1, %s27_s21), 0  ;;  %p224_p3 = pnand %p2354_p0, %p223_p2 }
   0x6   : > { %p260_p4 = scmp.lt.s32.totalorder (!%p224_p3), %s2946_s18, 1  ;;  %vm285_vm0 = vcmask (!%p224_p3), 1040384   ;;  %s2956_s7 = smov (!%p224_p3), 1e-05   ;;  %v320_v23 = vlaneseq (!%p224_p3) }
   0x7   : > { %227 = sbr.rel (%p224_p3) target bundleno = 691 (0x2b3), region = 40  ;;  %v2617_v21 = vld.sshfl [vmem:[%s4702_s0] sm:$0x33 pattern:$0x76325410] (!%p224_p3)  ;;  %s2356_s27 = sshll.u32 (!%p224_p3), %s2946_s18, 3 }
   0x8   : > { %v3031_v22 = vcombine.high (!%p224_p3), %v2617_v21, %v2617_v21  ;;  %v3035_v27 = vshrl.u32 (!%p224_p3), %v320_v23, 7  ;;  %p277_p5 = scmp.lt.s32.totalorder (!%p224_p3), %s2356_s27, 15 }
   0xa   : > { %2028 = vmatprep.mubr.bf16.mxu0 (!%p224_p3), %v3031_v22  ;;  %2069 = vmatprep.mubr.bf16.mxu1 (!%p224_p3), %v3031_v22  ;;  %v322_v30 = vsub.s32 (!%p224_p3), 0, %v3035_v27  ;;  %v326_v32 = vsub.s32 (!%p224_p3), 1, %v3035_v27  ;;  %v330_v33 = vsub.s32 (!%p224_p3), 2, %v3035_v27  ;;  %v334_v34 = vsub.s32 (!%p224_p3), 3, %v3035_v27 }
   0xb   : > { %v338_v35 = vsub.s32 (!%p224_p3), 4, %v3035_v27  ;;  %v342_v36 = vsub.s32 (!%p224_p3), 5, %v3035_v27  ;;  %v346_v37 = vsub.s32 (!%p224_p3), 6, %v3035_v27  ;;  %v350_v38 = vsub.s32 (!%p224_p3), 7, %v3035_v27 }
   0xe   : > { %s3012_s22 = scalar_select %p260_p4, %s2946_s18, 1 }
   0xf   : > { %s4993_s27 = smov (!%p277_p5, %s2356_s27), 15 }
  0x10   : > { %s262_s25 = scalar_lea.vmem %s4704_s2, %s3012_s22  ;;  %s265_s28 = scalar_lea.vmem %s4705_s3, %s3012_s22 }
  0x11   : > { %v284_v0 = vld [vmem:[%s262_s25] sm:$0x1]  ;;  %s2355_s9 = sshll.u32 %s3012_s22, 3 }
  0x12   : > { %v296_v1 = vld [vmem:[%s265_s28] sm:$0x1]  ;;  %v286_v2 = vsel %vm285_vm0, %v284_v0, inf  ;;  %s273_s12 = scalar_lea.vmem %s4706_s4, %s2355_s9 }
  0x13   : > { %287 = vmin.xlane.f32.xlu0 %v286_v2  ;;  %v297_v3 = vsel %vm285_vm0, %v296_v1, -inf  ;;  %v309_v19 = vld [vmem:[%s273_s12] sm:$0xff] }
  0x17   : > { %298 = vmax.xlane.f32.xlu0 %v297_v3 }
  0xa0   : > { %v288_v4 = vpop.xlane.xlu0 %287 }
  0xa1   : > { %v289_v5 = vrot.slane %v288_v4, 4 }
  0xa3   : > { %v290_v6 = vmin.f32 %v288_v4, %v289_v5  ;;  %v368_v4 = vld [vmem:[%s4703_s1] sm:$0xff] }
  0xa4   : > { %v299_v7 = vpop.xlane.xlu0 %298 }
  0xa5   : > { %v291_v8 = vrot.slane %v290_v6, 2  ;;  %v300_v9 = vrot.slane %v299_v7, 4 }
  0xa7   : > { %v301_v10 = vmax.f32 %v299_v7, %v300_v9  ;;  %v292_v11 = vmin.f32 %v290_v6, %v291_v8  ;;  %v372_v9 = vld [vmem:[%s4703_s1 + $0x20] sm:$0xff] }
  0xa9   : > { %v302_v12 = vrot.slane %v301_v10, 2  ;;  %v293_v13 = vrot.slane %v292_v11, 1 }
  0xab   : > { %v303_v14 = vmax.f32 %v301_v10, %v302_v12  ;;  %v294_v15 = vmin.f32 %v292_v11, %v293_v13  ;;  %v369_v10 = vld [vmem:[%s4703_s1 + $0x8] sm:$0xff] }
  0xac   : > { %v373_v11 = vld [vmem:[%s4703_s1 + $0x28] sm:$0xff] }
  0xad   : > { %2880 = vpush %v294_v15  ;;  %v304_v16 = vrot.slane %v303_v14, 1 }
  0xaf   : > { %v305_v17 = vmax.f32 %v303_v14, %v304_v16  ;;  %v2957_v16 = vmov 0  }
  0xb1   : > { %2882 = vpush %v305_v17 }
  0xde   : > { %s2881_s29 = spop %2880 }
  0xdf   : > { %v310_v20 = vstv %s2881_s29 }
  0xe0   : > { %v311_v24 = vsub.f32 %v309_v19, %v310_v20 }
  0xe2   : > { %s2883_s30 = spop %2882 }
  0xe3   : > { %s307_s6 = ssub.f32 %s2883_s30, %s2881_s29  ;;  %s279_s29 = scalar_lea.vmem %s4707_s5, %s4993_s27 }
  0xe5   : > { %s308_s8 = smax.f32 %s2956_s7, %s307_s6 }
  0xe6   : > { %v312_v18 = vstv %s308_s8 }
  0xe7   : > { %2928 = vrcp.f32 %v312_v18 }
  0xf1   : > { %v2929_v25 = vpop.eup %2928 }
  0xf2   : > { %v314_v26 = vmul.f32 %v2929_v25, %v311_v24 }
  0xf4   : > { %v315_v28 = vmul.f32 255.0, %v314_v26  ;;  %v376_v26 = vld [vmem:[%s4703_s1 + $0x40] sm:$0xff] }
  0xf6   : > { %v316_v29 = vmax.f32 %v315_v28, 0.0 }
  0xf8   : > { %v317_v31 = vmin.f32 %v316_v29, 255.0 }
  0xfa   : > { %v318_v39 = vfloor.f32 %v317_v31 }
  0xfc   : > { %v323_v40 = vrot.slane %v318_v39, %v322_v30  ;;  %v327_v41 = vrot.slane %v318_v39, %v326_v32  ;;  %v331_v42 = vrot.slane %v318_v39, %v330_v33  ;;  %v335_v43 = vrot.slane %v318_v39, %v334_v34  ;;  %v380_v32 = vld [vmem:[%s4703_s1 + $0x60] sm:$0xff]  ;;  %v377_v33 = vld [vmem:[%s4703_s1 + $0x48] sm:$0xff] }
  0xfd   : > { %v339_v44 = vrot.slane %v318_v39, %v338_v35  ;;  %v343_v45 = vrot.slane %v318_v39, %v342_v36  ;;  %v347_v46 = vrot.slane %v318_v39, %v346_v37  ;;  %v351_v47 = vrot.slane %v318_v39, %v350_v38  ;;  %v381_v34 = vld [vmem:[%s4703_s1 + $0x68] sm:$0xff]  ;;  %v404_v36 = vld [vmem:[%s4703_s1 + $0x120] sm:$0xff] }
  0xfe   : > { %v360_v48 = vpack.c.bf16 %v323_v40, %v323_v40  ;;  %v361_v49 = vpack.c.bf16 %v327_v41, %v327_v41  ;;  %v362_v50 = vpack.c.bf16 %v331_v42, %v331_v42  ;;  %v363_v51 = vpack.c.bf16 %v335_v43, %v335_v43  ;;  %v401_v37 = vld [vmem:[%s4703_s1 + $0x108] sm:$0xff] }
  0xff   : > { %v364_v52 = vpack.c.bf16 %v339_v44, %v339_v44  ;;  %v365_v53 = vpack.c.bf16 %v343_v45, %v343_v45  ;;  %v366_v54 = vpack.c.bf16 %v347_v46, %v347_v46  ;;  %v367_v55 = vpack.c.bf16 %v351_v47, %v351_v47  ;;  %v405_v38 = vld [vmem:[%s4703_s1 + $0x128] sm:$0xff] }
 0x100   : > { %v497_v56 = vpack.i.b16 %v360_v48, %v360_v48  ;;  %v504_v57 = vpack.i.b16 %v361_v49, %v361_v49  ;;  %v511_v58 = vpack.i.b16 %v362_v50, %v362_v50  ;;  %v518_v59 = vpack.i.b16 %v363_v51, %v363_v51  ;;  %v384_v48 = vld [vmem:[%s4703_s1 + $0x80] sm:$0xff] }
 0x101   : > { %v525_v60 = vpack.i.b16 %v364_v52, %v364_v52  ;;  %v532_v61 = vpack.i.b16 %v365_v53, %v365_v53  ;;  %v539_v62 = vpack.i.b16 %v366_v54, %v366_v54  ;;  %v546_v63 = vpack.i.b16 %v367_v55, %v367_v55  ;;  %v388_v53 = vld [vmem:[%s4703_s1 + $0xa0] sm:$0xff]  ;;  %v385_v54 = vld [vmem:[%s4703_s1 + $0x88] sm:$0xff] }
 0x102   : > { %v502_v0 = vrot.slane %v497_v56, %v322_v30  ;;  %v509_v1 = vrot.slane %v504_v57, %v322_v30  ;;  %v516_v2 = vrot.slane %v511_v58, %v322_v30  ;;  %v523_v3 = vrot.slane %v518_v59, %v322_v30  ;;  %v389_v55 = vld [vmem:[%s4703_s1 + $0xa8] sm:$0xff]  ;;  %v412_v57 = vld [vmem:[%s4703_s1 + $0x160] sm:$0xff] }
 0x103   : > { %v530_v5 = vrot.slane %v525_v60, %v322_v30  ;;  %v537_v6 = vrot.slane %v532_v61, %v322_v30  ;;  %v544_v7 = vrot.slane %v539_v62, %v322_v30  ;;  %v551_v8 = vrot.slane %v546_v63, %v322_v30  ;;  %v409_v58 = vld [vmem:[%s4703_s1 + $0x148] sm:$0xff] }
 0x104   : > { %v3057_v12 = vcombine.low %v502_v0, %v509_v1  ;;  %v3059_v13 = vcombine.low %v516_v2, %v523_v3  ;;  %v2958_v39 = vmov 1.0|1.0   ;;  %v413_v59 = vld [vmem:[%s4703_s1 + $0x168] sm:$0xff] }
 0x105   : > { %v3061_v14 = vcombine.low %v530_v5, %v537_v6  ;;  %v3063_v15 = vcombine.low %v544_v7, %v551_v8 }
 0x106   : > { %vm576_vm1 = vcmp.eq.bf16.partialorder %v368_v4, %v3057_v12  ;;  %vm580_vm2 = vcmp.eq.bf16.partialorder %v372_v9, %v3057_v12  ;;  %vm577_vm3 = vcmp.eq.bf16.partialorder %v369_v10, %v3059_v13  ;;  %vm581_vm4 = vcmp.eq.bf16.partialorder %v373_v11, %v3059_v13  ;;  %v392_v4 = vld [vmem:[%s4703_s1 + $0xc0] sm:$0xff]  ;;  %v393_v10 = vld [vmem:[%s4703_s1 + $0xc8] sm:$0xff] }
 0x107   : > { %v704_v17 = vsel %vm576_vm1, 65537, %v2957_v16  ;;  %v708_v18 = vsel %vm580_vm2, 65537, %v2957_v16  ;;  %v705_v19 = vsel %vm577_vm3, 65537, %v2957_v16  ;;  %v709_v20 = vsel %vm581_vm4, 65537, %v2957_v16  ;;  %v396_v9 = vld [vmem:[%s4703_s1 + $0xe0] sm:$0xff]  ;;  %v397_v11 = vld [vmem:[%s4703_s1 + $0xe8] sm:$0xff] }
 0x108   : > { %v833_v21 = vunpack.c.h.b16 %v704_v17  ;;  %v841_v23 = vunpack.c.h.b16 %v708_v18  ;;  %v835_v24 = vunpack.c.h.b16 %v705_v19  ;;  %v843_v25 = vunpack.c.h.b16 %v709_v20 }
 0x109   : > { %v832_v28 = vunpack.c.l.b16 %v704_v17  ;;  %v840_v29 = vunpack.c.l.b16 %v708_v18  ;;  %v834_v30 = vunpack.c.l.b16 %v705_v19  ;;  %v842_v31 = vunpack.c.l.b16 %v709_v20  ;;  %v420_v18 = vld [vmem:[%s4703_s1 + $0x1a0] sm:$0xff]  ;;  %v417_v19 = vld [vmem:[%s4703_s1 + $0x188] sm:$0xff] }
 0x10a   : > { %vm1089_vm5 = vcmp.ne.s32.totalorder %v833_v21, 0  ;;  %vm1097_vm6 = vcmp.ne.s32.totalorder %v841_v23, 0  ;;  %vm1091_vm7 = vcmp.ne.s32.totalorder %v835_v24, 0  ;;  %vm1099_vm8 = vcmp.ne.s32.totalorder %v843_v25, 0  ;;  %v421_v20 = vld [vmem:[%s4703_s1 + $0x1a8] sm:$0xff] }
 0x10b   : > { %vm2618_vm9 = vmpackc.low %vm1097_vm6, %vm1089_vm5  ;;  %vm3085_vm10 = vcmp.ne.s32.totalorder %v832_v28, 0  ;;  %vm3089_vm11 = vcmp.ne.s32.totalorder %v840_v29, 0  ;;  %vm3093_vm12 = vcmp.ne.s32.totalorder %v834_v30, 0  ;;  %vm3097_vm13 = vcmp.ne.s32.totalorder %v842_v31, 0  ;;  %v400_v31 = vld [vmem:[%s4703_s1 + $0x100] sm:$0xff] }
 0x10c   : > { %2619 = vmatprep.subr.msk.bf16.mxu0 %vm2618_vm9, %v2958_v39  ;;  %vm2682_vm14 = vmpackc.low %vm1099_vm8, %vm1091_vm7  ;;  %vm584_vm15 = vcmp.eq.bf16.partialorder %v376_v26, %v3057_v12  ;;  %vm588_vm1 = vcmp.eq.bf16.partialorder %v380_v32, %v3057_v12  ;;  %vm585_vm2 = vcmp.eq.bf16.partialorder %v377_v33, %v3059_v13  ;;  %vm589_vm3 = vcmp.eq.bf16.partialorder %v381_v34, %v3059_v13 }
 0x10d   : > { %2683 = vmatprep.subr.msk.bf16.mxu1 %vm2682_vm14, %v2958_v39  ;;  %vm2620_vm4 = vmpackc.low %vm3089_vm11, %vm3085_vm10  ;;  %v712_v40 = vsel %vm584_vm15, 65537, %v2957_v16  ;;  %v716_v41 = vsel %vm588_vm1, 65537, %v2957_v16  ;;  %v713_v42 = vsel %vm585_vm2, 65537, %v2957_v16  ;;  %v717_v43 = vsel %vm589_vm3, 65537, %v2957_v16 }
 0x10e   : > { %2621 = vmatpush1.bf16.msk.msra.mxu0 %vm2620_vm4, %v2958_v39  ;;  %vm2684_vm5 = vmpackc.low %vm3097_vm13, %vm3093_vm12  ;;  %v849_v44 = vunpack.c.h.b16 %v712_v40  ;;  %v857_v45 = vunpack.c.h.b16 %v716_v41  ;;  %v851_v46 = vunpack.c.h.b16 %v713_v42  ;;  %v859_v47 = vunpack.c.h.b16 %v717_v43 }
 0x10f   : > { %2685 = vmatpush1.bf16.msk.msra.mxu1 %vm2684_vm5, %v2958_v39  ;;  %v848_v49 = vunpack.c.l.b16 %v712_v40  ;;  %v856_v50 = vunpack.c.l.b16 %v716_v41  ;;  %v850_v51 = vunpack.c.l.b16 %v713_v42  ;;  %v858_v52 = vunpack.c.l.b16 %v717_v43  ;;  %v428_v41 = vld [vmem:[%s4703_s1 + $0x1e0] sm:$0xff]  ;;  %v425_v42 = vld [vmem:[%s4703_s1 + $0x1c8] sm:$0xff] }
 0x110   : > { %vm1105_vm6 = vcmp.ne.s32.totalorder %v849_v44, 0  ;;  %vm1113_vm7 = vcmp.ne.s32.totalorder %v857_v45, 0  ;;  %vm1107_vm8 = vcmp.ne.s32.totalorder %v851_v46, 0  ;;  %vm1115_vm9 = vcmp.ne.s32.totalorder %v859_v47, 0  ;;  %v429_v43 = vld [vmem:[%s4703_s1 + $0x1e8] sm:$0xff] }
 0x111   : > { %vm2622_vm10 = vmpackc.low %vm1113_vm7, %vm1105_vm6  ;;  %vm3133_vm11 = vcmp.ne.s32.totalorder %v848_v49, 0  ;;  %vm3137_vm12 = vcmp.ne.s32.totalorder %v856_v50, 0  ;;  %vm3141_vm13 = vcmp.ne.s32.totalorder %v850_v51, 0  ;;  %vm3145_vm14 = vcmp.ne.s32.totalorder %v858_v52, 0  ;;  %v408_v52 = vld [vmem:[%s4703_s1 + $0x140] sm:$0xff] }
 0x112   : > { %2623 = vmatprep.subr.msk.bf16.mxu0 %vm2622_vm10, %v2958_v39  ;;  %vm2686_vm15 = vmpackc.low %vm1115_vm9, %vm1107_vm8  ;;  %vm592_vm1 = vcmp.eq.bf16.partialorder %v384_v48, %v3057_v12  ;;  %vm596_vm2 = vcmp.eq.bf16.partialorder %v388_v53, %v3057_v12  ;;  %vm593_vm3 = vcmp.eq.bf16.partialorder %v385_v54, %v3059_v13  ;;  %vm597_vm4 = vcmp.eq.bf16.partialorder %v389_v55, %v3059_v13 }
 0x113   : > { %2687 = vmatprep.subr.msk.bf16.mxu1 %vm2686_vm15, %v2958_v39  ;;  %vm2624_vm5 = vmpackc.low %vm3137_vm12, %vm3133_vm11  ;;  %v720_v60 = vsel %vm592_vm1, 65537, %v2957_v16  ;;  %v724_v61 = vsel %vm596_vm2, 65537, %v2957_v16  ;;  %v721_v62 = vsel %vm593_vm3, 65537, %v2957_v16  ;;  %v725_v63 = vsel %vm597_vm4, 65537, %v2957_v16 }
 0x114   : > { %2625 = vmatpush1.bf16.msk.msra.mxu0 %vm2624_vm5, %v2958_v39  ;;  %vm2688_vm6 = vmpackc.low %vm3145_vm14, %vm3141_vm13  ;;  %v865_v0 = vunpack.c.h.b16 %v720_v60  ;;  %v873_v1 = vunpack.c.h.b16 %v724_v61  ;;  %v867_v2 = vunpack.c.h.b16 %v721_v62  ;;  %v875_v3 = vunpack.c.h.b16 %v725_v63 }
 0x115   : > { %2689 = vmatpush1.bf16.msk.msra.mxu1 %vm2688_vm6, %v2958_v39  ;;  %v864_v5 = vunpack.c.l.b16 %v720_v60  ;;  %v872_v6 = vunpack.c.l.b16 %v724_v61  ;;  %v866_v7 = vunpack.c.l.b16 %v721_v62  ;;  %v874_v8 = vunpack.c.l.b16 %v725_v63  ;;  %v436_v61 = vld [vmem:[%s4703_s1 + $0x220] sm:$0xff]  ;;  %v433_v62 = vld [vmem:[%s4703_s1 + $0x208] sm:$0xff] }
 0x116   : > { %vm1121_vm7 = vcmp.ne.s32.totalorder %v865_v0, 0  ;;  %vm1129_vm8 = vcmp.ne.s32.totalorder %v873_v1, 0  ;;  %vm1123_vm9 = vcmp.ne.s32.totalorder %v867_v2, 0  ;;  %vm1131_vm10 = vcmp.ne.s32.totalorder %v875_v3, 0  ;;  %v437_v63 = vld [vmem:[%s4703_s1 + $0x228] sm:$0xff] }
 0x117   : > { %vm2626_vm11 = vmpackc.low %vm1129_vm8, %vm1121_vm7  ;;  %vm3181_vm12 = vcmp.ne.s32.totalorder %v864_v5, 0  ;;  %vm3185_vm13 = vcmp.ne.s32.totalorder %v872_v6, 0  ;;  %vm3189_vm14 = vcmp.ne.s32.totalorder %v866_v7, 0  ;;  %vm3193_vm15 = vcmp.ne.s32.totalorder %v874_v8, 0  ;;  %v416_v8 = vld [vmem:[%s4703_s1 + $0x180] sm:$0xff] }
 0x118   : > { %2627 = vmatprep.subr.msk.bf16.mxu0 %vm2626_vm11, %v2958_v39  ;;  %vm2690_vm1 = vmpackc.low %vm1131_vm10, %vm1123_vm9  ;;  %vm600_vm2 = vcmp.eq.bf16.partialorder %v392_v4, %v3057_v12  ;;  %vm604_vm3 = vcmp.eq.bf16.partialorder %v396_v9, %v3057_v12  ;;  %vm601_vm4 = vcmp.eq.bf16.partialorder %v393_v10, %v3059_v13  ;;  %vm605_vm5 = vcmp.eq.bf16.partialorder %v397_v11, %v3059_v13 }
 0x119   : > { %2691 = vmatprep.subr.msk.bf16.mxu1 %vm2690_vm1, %v2958_v39  ;;  %vm2628_vm6 = vmpackc.low %vm3185_vm13, %vm3181_vm12  ;;  %v728_v21 = vsel %vm600_vm2, 65537, %v2957_v16  ;;  %v732_v23 = vsel %vm604_vm3, 65537, %v2957_v16  ;;  %v729_v24 = vsel %vm601_vm4, 65537, %v2957_v16  ;;  %v733_v25 = vsel %vm605_vm5, 65537, %v2957_v16 }
 0x11a   : > { %2629 = vmatpush1.bf16.msk.msra.mxu0 %vm2628_vm6, %v2958_v39  ;;  %vm2692_vm7 = vmpackc.low %vm3193_vm15, %vm3189_vm14  ;;  %v881_v26 = vunpack.c.h.b16 %v728_v21  ;;  %v889_v28 = vunpack.c.h.b16 %v732_v23  ;;  %v883_v29 = vunpack.c.h.b16 %v729_v24  ;;  %v891_v30 = vunpack.c.h.b16 %v733_v25 }
 0x11b   : > { %2693 = vmatpush1.bf16.msk.msra.mxu1 %vm2692_vm7, %v2958_v39  ;;  %v880_v32 = vunpack.c.l.b16 %v728_v21  ;;  %v888_v33 = vunpack.c.l.b16 %v732_v23  ;;  %v882_v34 = vunpack.c.l.b16 %v729_v24  ;;  %v890_v35 = vunpack.c.l.b16 %v733_v25  ;;  %v444_v23 = vld [vmem:[%s4703_s1 + $0x260] sm:$0xff]  ;;  %v441_v24 = vld [vmem:[%s4703_s1 + $0x248] sm:$0xff] }
 0x11c   : > { %vm1137_vm8 = vcmp.ne.s32.totalorder %v881_v26, 0  ;;  %vm1145_vm9 = vcmp.ne.s32.totalorder %v889_v28, 0  ;;  %vm1139_vm10 = vcmp.ne.s32.totalorder %v883_v29, 0  ;;  %vm1147_vm11 = vcmp.ne.s32.totalorder %v891_v30, 0  ;;  %v445_v25 = vld [vmem:[%s4703_s1 + $0x268] sm:$0xff] }
 0x11d   : > { %vm2630_vm12 = vmpackc.low %vm1145_vm9, %vm1137_vm8  ;;  %vm3229_vm13 = vcmp.ne.s32.totalorder %v880_v32, 0  ;;  %vm3233_vm14 = vcmp.ne.s32.totalorder %v888_v33, 0  ;;  %vm3237_vm15 = vcmp.ne.s32.totalorder %v882_v34, 0  ;;  %vm3241_vm1 = vcmp.ne.s32.totalorder %v890_v35, 0  ;;  %v424_v35 = vld [vmem:[%s4703_s1 + $0x1c0] sm:$0xff] }
 0x11e   : > { %2631 = vmatprep.subr.msk.bf16.mxu0 %vm2630_vm12, %v2958_v39  ;;  %vm2694_vm2 = vmpackc.low %vm1147_vm11, %vm1139_vm10  ;;  %vm608_vm3 = vcmp.eq.bf16.partialorder %v400_v31, %v3057_v12  ;;  %vm612_vm4 = vcmp.eq.bf16.partialorder %v404_v36, %v3057_v12  ;;  %vm609_vm5 = vcmp.eq.bf16.partialorder %v401_v37, %v3059_v13  ;;  %vm613_vm6 = vcmp.eq.bf16.partialorder %v405_v38, %v3059_v13 }
 0x11f   : > { %2695 = vmatprep.subr.msk.bf16.mxu1 %vm2694_vm2, %v2958_v39  ;;  %vm2632_vm7 = vmpackc.low %vm3233_vm14, %vm3229_vm13  ;;  %v736_v44 = vsel %vm608_vm3, 65537, %v2957_v16  ;;  %v740_v45 = vsel %vm612_vm4, 65537, %v2957_v16  ;;  %v737_v46 = vsel %vm609_vm5, 65537, %v2957_v16  ;;  %v741_v47 = vsel %vm613_vm6, 65537, %v2957_v16 }
 0x120   : > { %2633 = vmatpush1.bf16.msk.msra.mxu0 %vm2632_vm7, %v2958_v39  ;;  %vm2696_vm8 = vmpackc.low %vm3241_vm1, %vm3237_vm15  ;;  %v897_v48 = vunpack.c.h.b16 %v736_v44  ;;  %v905_v49 = vunpack.c.h.b16 %v740_v45  ;;  %v899_v50 = vunpack.c.h.b16 %v737_v46  ;;  %v907_v51 = vunpack.c.h.b16 %v741_v47 }
 0x121   : > { %2697 = vmatpush1.bf16.msk.msra.mxu1 %vm2696_vm8, %v2958_v39  ;;  %v896_v53 = vunpack.c.l.b16 %v736_v44  ;;  %v904_v54 = vunpack.c.l.b16 %v740_v45  ;;  %v898_v55 = vunpack.c.l.b16 %v737_v46  ;;  %v906_v56 = vunpack.c.l.b16 %v741_v47  ;;  %v452_v45 = vld [vmem:[%s4703_s1 + $0x2a0] sm:$0xff]  ;;  %v449_v46 = vld [vmem:[%s4703_s1 + $0x288] sm:$0xff] }
 0x122   : > { %vm1153_vm9 = vcmp.ne.s32.totalorder %v897_v48, 0  ;;  %vm1161_vm10 = vcmp.ne.s32.totalorder %v905_v49, 0  ;;  %vm1155_vm11 = vcmp.ne.s32.totalorder %v899_v50, 0  ;;  %vm1163_vm12 = vcmp.ne.s32.totalorder %v907_v51, 0  ;;  %v453_v47 = vld [vmem:[%s4703_s1 + $0x2a8] sm:$0xff] }
 0x123   : > { %vm2634_vm13 = vmpackc.low %vm1161_vm10, %vm1153_vm9  ;;  %vm3277_vm14 = vcmp.ne.s32.totalorder %v896_v53, 0  ;;  %vm3281_vm15 = vcmp.ne.s32.totalorder %v904_v54, 0  ;;  %vm3285_vm1 = vcmp.ne.s32.totalorder %v898_v55, 0  ;;  %vm3289_vm2 = vcmp.ne.s32.totalorder %v906_v56, 0  ;;  %v432_v56 = vld [vmem:[%s4703_s1 + $0x200] sm:$0xff] }
 0x124   : > { %2635 = vmatprep.subr.msk.bf16.mxu0 %vm2634_vm13, %v2958_v39  ;;  %vm2698_vm3 = vmpackc.low %vm1163_vm12, %vm1155_vm11  ;;  %vm616_vm4 = vcmp.eq.bf16.partialorder %v408_v52, %v3057_v12  ;;  %vm620_vm5 = vcmp.eq.bf16.partialorder %v412_v57, %v3057_v12  ;;  %vm617_vm6 = vcmp.eq.bf16.partialorder %v409_v58, %v3059_v13  ;;  %vm621_vm7 = vcmp.eq.bf16.partialorder %v413_v59, %v3059_v13 }
 0x125   : > { %2699 = vmatprep.subr.msk.bf16.mxu1 %vm2698_vm3, %v2958_v39  ;;  %vm2636_vm8 = vmpackc.low %vm3281_vm15, %vm3277_vm14  ;;  %v744_v0 = vsel %vm616_vm4, 65537, %v2957_v16  ;;  %v748_v1 = vsel %vm620_vm5, 65537, %v2957_v16  ;;  %v745_v2 = vsel %vm617_vm6, 65537, %v2957_v16  ;;  %v749_v3 = vsel %vm621_vm7, 65537, %v2957_v16 }
 0x126   : > { %2637 = vmatpush1.bf16.msk.msra.mxu0 %vm2636_vm8, %v2958_v39  ;;  %vm2700_vm9 = vmpackc.low %vm3289_vm2, %vm3285_vm1  ;;  %v913_v4 = vunpack.c.h.b16 %v744_v0  ;;  %v921_v5 = vunpack.c.h.b16 %v748_v1  ;;  %v915_v6 = vunpack.c.h.b16 %v745_v2  ;;  %v923_v7 = vunpack.c.h.b16 %v749_v3 }
 0x127   : > { %2701 = vmatpush1.bf16.msk.msra.mxu1 %vm2700_vm9, %v2958_v39  ;;  %v912_v9 = vunpack.c.l.b16 %v744_v0  ;;  %v920_v10 = vunpack.c.l.b16 %v748_v1  ;;  %v914_v11 = vunpack.c.l.b16 %v745_v2  ;;  %v922_v17 = vunpack.c.l.b16 %v749_v3  ;;  %v460_v1 = vld [vmem:[%s4703_s1 + $0x2e0] sm:$0xff]  ;;  %v457_v2 = vld [vmem:[%s4703_s1 + $0x2c8] sm:$0xff] }
 0x128   : > { %vm1169_vm10 = vcmp.ne.s32.totalorder %v913_v4, 0  ;;  %vm1177_vm11 = vcmp.ne.s32.totalorder %v921_v5, 0  ;;  %vm1171_vm12 = vcmp.ne.s32.totalorder %v915_v6, 0  ;;  %vm1179_vm13 = vcmp.ne.s32.totalorder %v923_v7, 0  ;;  %v461_v3 = vld [vmem:[%s4703_s1 + $0x2e8] sm:$0xff] }
 0x129   : > { %vm2638_vm14 = vmpackc.low %vm1177_vm11, %vm1169_vm10  ;;  %vm3325_vm15 = vcmp.ne.s32.totalorder %v912_v9, 0  ;;  %vm3329_vm1 = vcmp.ne.s32.totalorder %v920_v10, 0  ;;  %vm3333_vm2 = vcmp.ne.s32.totalorder %v914_v11, 0  ;;  %vm3337_vm3 = vcmp.ne.s32.totalorder %v922_v17, 0  ;;  %v440_v17 = vld [vmem:[%s4703_s1 + $0x240] sm:$0xff] }
 0x12a   : > { %2639 = vmatprep.subr.msk.bf16.mxu0 %vm2638_vm14, %v2958_v39  ;;  %vm2702_vm4 = vmpackc.low %vm1179_vm13, %vm1171_vm12  ;;  %vm624_vm5 = vcmp.eq.bf16.partialorder %v416_v8, %v3057_v12  ;;  %vm628_vm6 = vcmp.eq.bf16.partialorder %v420_v18, %v3057_v12  ;;  %vm625_vm7 = vcmp.eq.bf16.partialorder %v417_v19, %v3059_v13  ;;  %vm629_vm8 = vcmp.eq.bf16.partialorder %v421_v20, %v3059_v13 }
 0x12b   : > { %2703 = vmatprep.subr.msk.bf16.mxu1 %vm2702_vm4, %v2958_v39  ;;  %vm2640_vm9 = vmpackc.low %vm3329_vm1, %vm3325_vm15  ;;  %v752_v26 = vsel %vm624_vm5, 65537, %v2957_v16  ;;  %v756_v28 = vsel %vm628_vm6, 65537, %v2957_v16  ;;  %v753_v29 = vsel %vm625_vm7, 65537, %v2957_v16  ;;  %v757_v30 = vsel %vm629_vm8, 65537, %v2957_v16 }
 0x12c   : > { %2641 = vmatpush1.bf16.msk.msra.mxu0 %vm2640_vm9, %v2958_v39  ;;  %vm2704_vm10 = vmpackc.low %vm3337_vm3, %vm3333_vm2  ;;  %v929_v31 = vunpack.c.h.b16 %v752_v26  ;;  %v937_v32 = vunpack.c.h.b16 %v756_v28  ;;  %v931_v33 = vunpack.c.h.b16 %v753_v29  ;;  %v939_v34 = vunpack.c.h.b16 %v757_v30 }
 0x12d   : > { %2705 = vmatpush1.bf16.msk.msra.mxu1 %vm2704_vm10, %v2958_v39  ;;  %v928_v36 = vunpack.c.l.b16 %v752_v26  ;;  %v936_v37 = vunpack.c.l.b16 %v756_v28  ;;  %v930_v38 = vunpack.c.l.b16 %v753_v29  ;;  %v938_v40 = vunpack.c.l.b16 %v757_v30  ;;  %v468_v28 = vld [vmem:[%s4703_s1 + $0x320] sm:$0xff]  ;;  %v465_v29 = vld [vmem:[%s4703_s1 + $0x308] sm:$0xff] }
 0x12e   : > { %vm1185_vm11 = vcmp.ne.s32.totalorder %v929_v31, 0  ;;  %vm1193_vm12 = vcmp.ne.s32.totalorder %v937_v32, 0  ;;  %vm1187_vm13 = vcmp.ne.s32.totalorder %v931_v33, 0  ;;  %vm1195_vm14 = vcmp.ne.s32.totalorder %v939_v34, 0  ;;  %v469_v30 = vld [vmem:[%s4703_s1 + $0x328] sm:$0xff] }
 0x12f   : > { %vm2642_vm15 = vmpackc.low %vm1193_vm12, %vm1185_vm11  ;;  %vm3373_vm1 = vcmp.ne.s32.totalorder %v928_v36, 0  ;;  %vm3377_vm2 = vcmp.ne.s32.totalorder %v936_v37, 0  ;;  %vm3381_vm3 = vcmp.ne.s32.totalorder %v930_v38, 0  ;;  %vm3385_vm4 = vcmp.ne.s32.totalorder %v938_v40, 0  ;;  %v448_v40 = vld [vmem:[%s4703_s1 + $0x280] sm:$0xff] }
 0x130   : > { %2643 = vmatprep.subr.msk.bf16.mxu0 %vm2642_vm15, %v2958_v39  ;;  %vm2706_vm5 = vmpackc.low %vm1195_vm14, %vm1187_vm13  ;;  %vm632_vm6 = vcmp.eq.bf16.partialorder %v424_v35, %v3057_v12  ;;  %vm636_vm7 = vcmp.eq.bf16.partialorder %v428_v41, %v3057_v12  ;;  %vm633_vm8 = vcmp.eq.bf16.partialorder %v425_v42, %v3059_v13  ;;  %vm637_vm9 = vcmp.eq.bf16.partialorder %v429_v43, %v3059_v13 }
 0x131   : > { %2707 = vmatprep.subr.msk.bf16.mxu1 %vm2706_vm5, %v2958_v39  ;;  %vm2644_vm10 = vmpackc.low %vm3377_vm2, %vm3373_vm1  ;;  %v760_v48 = vsel %vm632_vm6, 65537, %v2957_v16  ;;  %v764_v49 = vsel %vm636_vm7, 65537, %v2957_v16  ;;  %v761_v50 = vsel %vm633_vm8, 65537, %v2957_v16  ;;  %v765_v51 = vsel %vm637_vm9, 65537, %v2957_v16 }
 0x132   : > { %2645 = vmatpush1.bf16.msk.msra.mxu0 %vm2644_vm10, %v2958_v39  ;;  %vm2708_vm11 = vmpackc.low %vm3385_vm4, %vm3381_vm3  ;;  %v945_v52 = vunpack.c.h.b16 %v760_v48  ;;  %v953_v53 = vunpack.c.h.b16 %v764_v49  ;;  %v947_v54 = vunpack.c.h.b16 %v761_v50  ;;  %v955_v55 = vunpack.c.h.b16 %v765_v51 }
 0x133   : > { %2709 = vmatpush1.bf16.msk.msra.mxu1 %vm2708_vm11, %v2958_v39  ;;  %v944_v57 = vunpack.c.l.b16 %v760_v48  ;;  %v952_v58 = vunpack.c.l.b16 %v764_v49  ;;  %v946_v59 = vunpack.c.l.b16 %v761_v50  ;;  %v954_v60 = vunpack.c.l.b16 %v765_v51  ;;  %v476_v49 = vld [vmem:[%s4703_s1 + $0x360] sm:$0xff]  ;;  %v473_v50 = vld [vmem:[%s4703_s1 + $0x348] sm:$0xff] }
 0x134   : > { %vm1201_vm12 = vcmp.ne.s32.totalorder %v945_v52, 0  ;;  %vm1209_vm13 = vcmp.ne.s32.totalorder %v953_v53, 0  ;;  %vm1203_vm14 = vcmp.ne.s32.totalorder %v947_v54, 0  ;;  %vm1211_vm15 = vcmp.ne.s32.totalorder %v955_v55, 0  ;;  %v477_v51 = vld [vmem:[%s4703_s1 + $0x368] sm:$0xff] }
 0x135   : > { %vm2646_vm1 = vmpackc.low %vm1209_vm13, %vm1201_vm12  ;;  %vm3421_vm2 = vcmp.ne.s32.totalorder %v944_v57, 0  ;;  %vm3425_vm3 = vcmp.ne.s32.totalorder %v952_v58, 0  ;;  %vm3429_vm4 = vcmp.ne.s32.totalorder %v946_v59, 0  ;;  %vm3433_vm5 = vcmp.ne.s32.totalorder %v954_v60, 0  ;;  %v456_v60 = vld [vmem:[%s4703_s1 + $0x2c0] sm:$0xff] }
 0x136   : > { %2647 = vmatprep.subr.msk.bf16.mxu0 %vm2646_vm1, %v2958_v39  ;;  %vm2710_vm6 = vmpackc.low %vm1211_vm15, %vm1203_vm14  ;;  %vm640_vm7 = vcmp.eq.bf16.partialorder %v432_v56, %v3057_v12  ;;  %vm644_vm8 = vcmp.eq.bf16.partialorder %v436_v61, %v3057_v12  ;;  %vm641_vm9 = vcmp.eq.bf16.partialorder %v433_v62, %v3059_v13  ;;  %vm645_vm10 = vcmp.eq.bf16.partialorder %v437_v63, %v3059_v13 }
 0x137   : > { %2711 = vmatprep.subr.msk.bf16.mxu1 %vm2710_vm6, %v2958_v39  ;;  %vm2648_vm11 = vmpackc.low %vm3425_vm3, %vm3421_vm2  ;;  %v768_v4 = vsel %vm640_vm7, 65537, %v2957_v16  ;;  %v772_v5 = vsel %vm644_vm8, 65537, %v2957_v16  ;;  %v769_v6 = vsel %vm641_vm9, 65537, %v2957_v16  ;;  %v773_v7 = vsel %vm645_vm10, 65537, %v2957_v16 }
 0x138   : > { %2649 = vmatpush1.bf16.msk.msra.mxu0 %vm2648_vm11, %v2958_v39  ;;  %vm2712_vm12 = vmpackc.low %vm3433_vm5, %vm3429_vm4  ;;  %v961_v8 = vunpack.c.h.b16 %v768_v4  ;;  %v969_v9 = vunpack.c.h.b16 %v772_v5  ;;  %v963_v10 = vunpack.c.h.b16 %v769_v6  ;;  %v971_v11 = vunpack.c.h.b16 %v773_v7 }
 0x139   : > { %2713 = vmatpush1.bf16.msk.msra.mxu1 %vm2712_vm12, %v2958_v39  ;;  %v960_v18 = vunpack.c.l.b16 %v768_v4  ;;  %v968_v19 = vunpack.c.l.b16 %v772_v5  ;;  %v962_v20 = vunpack.c.l.b16 %v769_v6  ;;  %v970_v21 = vunpack.c.l.b16 %v773_v7  ;;  %v484_v5 = vld [vmem:[%s4703_s1 + $0x3a0] sm:$0xff]  ;;  %v481_v6 = vld [vmem:[%s4703_s1 + $0x388] sm:$0xff] }
 0x13a   : > { %vm1217_vm13 = vcmp.ne.s32.totalorder %v961_v8, 0  ;;  %vm1225_vm14 = vcmp.ne.s32.totalorder %v969_v9, 0  ;;  %vm1219_vm15 = vcmp.ne.s32.totalorder %v963_v10, 0  ;;  %vm1227_vm1 = vcmp.ne.s32.totalorder %v971_v11, 0  ;;  %v485_v7 = vld [vmem:[%s4703_s1 + $0x3a8] sm:$0xff] }
 0x13b   : > { %vm2650_vm2 = vmpackc.low %vm1225_vm14, %vm1217_vm13  ;;  %vm3469_vm3 = vcmp.ne.s32.totalorder %v960_v18, 0  ;;  %vm3473_vm4 = vcmp.ne.s32.totalorder %v968_v19, 0  ;;  %vm3477_vm5 = vcmp.ne.s32.totalorder %v962_v20, 0  ;;  %vm3481_vm6 = vcmp.ne.s32.totalorder %v970_v21, 0  ;;  %v464_v21 = vld [vmem:[%s4703_s1 + $0x300] sm:$0xff] }
 0x13c   : > { %2651 = vmatprep.subr.msk.bf16.mxu0 %vm2650_vm2, %v2958_v39  ;;  %vm2714_vm7 = vmpackc.low %vm1227_vm1, %vm1219_vm15  ;;  %vm648_vm8 = vcmp.eq.bf16.partialorder %v440_v17, %v3057_v12  ;;  %vm652_vm9 = vcmp.eq.bf16.partialorder %v444_v23, %v3057_v12  ;;  %vm649_vm10 = vcmp.eq.bf16.partialorder %v441_v24, %v3059_v13  ;;  %vm653_vm11 = vcmp.eq.bf16.partialorder %v445_v25, %v3059_v13 }
 0x13d   : > { %2715 = vmatprep.subr.msk.bf16.mxu1 %vm2714_vm7, %v2958_v39  ;;  %vm2652_vm12 = vmpackc.low %vm3473_vm4, %vm3469_vm3  ;;  %v776_v31 = vsel %vm648_vm8, 65537, %v2957_v16  ;;  %v780_v32 = vsel %vm652_vm9, 65537, %v2957_v16  ;;  %v777_v33 = vsel %vm649_vm10, 65537, %v2957_v16  ;;  %v781_v34 = vsel %vm653_vm11, 65537, %v2957_v16 }
 0x13e   : > { %2653 = vmatpush1.bf16.msk.msra.mxu0 %vm2652_vm12, %v2958_v39  ;;  %vm2716_vm13 = vmpackc.low %vm3481_vm6, %vm3477_vm5  ;;  %v977_v35 = vunpack.c.h.b16 %v776_v31  ;;  %v985_v36 = vunpack.c.h.b16 %v780_v32  ;;  %v979_v37 = vunpack.c.h.b16 %v777_v33  ;;  %v987_v38 = vunpack.c.h.b16 %v781_v34 }
 0x13f   : > { %2717 = vmatpush1.bf16.msk.msra.mxu1 %vm2716_vm13, %v2958_v39  ;;  %v976_v41 = vunpack.c.l.b16 %v776_v31  ;;  %v984_v42 = vunpack.c.l.b16 %v780_v32  ;;  %v978_v43 = vunpack.c.l.b16 %v777_v33  ;;  %v986_v44 = vunpack.c.l.b16 %v781_v34  ;;  %v492_v32 = vld [vmem:[%s4703_s1 + $0x3e0] sm:$0xff]  ;;  %v489_v33 = vld [vmem:[%s4703_s1 + $0x3c8] sm:$0xff] }
 0x140   : > { %vm1233_vm14 = vcmp.ne.s32.totalorder %v977_v35, 0  ;;  %vm1241_vm15 = vcmp.ne.s32.totalorder %v985_v36, 0  ;;  %vm1235_vm1 = vcmp.ne.s32.totalorder %v979_v37, 0  ;;  %vm1243_vm2 = vcmp.ne.s32.totalorder %v987_v38, 0  ;;  %v493_v34 = vld [vmem:[%s4703_s1 + $0x3e8] sm:$0xff] }
 0x141   : > { %vm2654_vm3 = vmpackc.low %vm1241_vm15, %vm1233_vm14  ;;  %vm3517_vm4 = vcmp.ne.s32.totalorder %v976_v41, 0  ;;  %vm3521_vm5 = vcmp.ne.s32.totalorder %v984_v42, 0  ;;  %vm3525_vm6 = vcmp.ne.s32.totalorder %v978_v43, 0  ;;  %vm3529_vm7 = vcmp.ne.s32.totalorder %v986_v44, 0  ;;  %v472_v44 = vld [vmem:[%s4703_s1 + $0x340] sm:$0xff] }
 0x142   : > { %2655 = vmatprep.subr.msk.bf16.mxu0 %vm2654_vm3, %v2958_v39  ;;  %vm2718_vm8 = vmpackc.low %vm1243_vm2, %vm1235_vm1  ;;  %vm656_vm9 = vcmp.eq.bf16.partialorder %v448_v40, %v3057_v12  ;;  %vm660_vm10 = vcmp.eq.bf16.partialorder %v452_v45, %v3057_v12  ;;  %vm657_vm11 = vcmp.eq.bf16.partialorder %v449_v46, %v3059_v13  ;;  %vm661_vm12 = vcmp.eq.bf16.partialorder %v453_v47, %v3059_v13 }
 0x143   : > { %2719 = vmatprep.subr.msk.bf16.mxu1 %vm2718_vm8, %v2958_v39  ;;  %vm2656_vm13 = vmpackc.low %vm3521_vm5, %vm3517_vm4  ;;  %v784_v52 = vsel %vm656_vm9, 65537, %v2957_v16  ;;  %v788_v53 = vsel %vm660_vm10, 65537, %v2957_v16  ;;  %v785_v54 = vsel %vm657_vm11, 65537, %v2957_v16  ;;  %v789_v55 = vsel %vm661_vm12, 65537, %v2957_v16 }
 0x144   : > { %2657 = vmatpush1.bf16.msk.msra.mxu0 %vm2656_vm13, %v2958_v39  ;;  %vm2720_vm14 = vmpackc.low %vm3529_vm7, %vm3525_vm6  ;;  %v993_v56 = vunpack.c.h.b16 %v784_v52  ;;  %v1001_v57 = vunpack.c.h.b16 %v788_v53  ;;  %v995_v58 = vunpack.c.h.b16 %v785_v54  ;;  %v1003_v59 = vunpack.c.h.b16 %v789_v55 }
 0x145   : > { %2721 = vmatpush1.bf16.msk.msra.mxu1 %vm2720_vm14, %v2958_v39  ;;  %v992_v61 = vunpack.c.l.b16 %v784_v52  ;;  %v1000_v62 = vunpack.c.l.b16 %v788_v53  ;;  %v994_v63 = vunpack.c.l.b16 %v785_v54  ;;  %v1002_v0 = vunpack.c.l.b16 %v789_v55  ;;  %v371_v52 = vld [vmem:[%s4703_s1 + $0x18] sm:$0xff] }
 0x146   : > { %vm1249_vm15 = vcmp.ne.s32.totalorder %v993_v56, 0  ;;  %vm1257_vm1 = vcmp.ne.s32.totalorder %v1001_v57, 0  ;;  %vm1251_vm2 = vcmp.ne.s32.totalorder %v995_v58, 0  ;;  %vm1259_vm3 = vcmp.ne.s32.totalorder %v1003_v59, 0  ;;  %v375_v53 = vld [vmem:[%s4703_s1 + $0x38] sm:$0xff] }
 0x147   : > { %vm2658_vm4 = vmpackc.low %vm1257_vm1, %vm1249_vm15  ;;  %vm3565_vm5 = vcmp.ne.s32.totalorder %v992_v61, 0  ;;  %vm3569_vm6 = vcmp.ne.s32.totalorder %v1000_v62, 0  ;;  %vm3573_vm7 = vcmp.ne.s32.totalorder %v994_v63, 0  ;;  %vm3577_vm8 = vcmp.ne.s32.totalorder %v1002_v0, 0  ;;  %v480_v0 = vld [vmem:[%s4703_s1 + $0x380] sm:$0xff]  ;;  %v395_v55 = vld [vmem:[%s4703_s1 + $0xd8] sm:$0xff] }
 0x148   : > { %2659 = vmatprep.subr.msk.bf16.mxu0 %vm2658_vm4, %v2958_v39  ;;  %vm2722_vm9 = vmpackc.low %vm1259_vm3, %vm1251_vm2  ;;  %vm664_vm10 = vcmp.eq.bf16.partialorder %v456_v60, %v3057_v12  ;;  %vm668_vm11 = vcmp.eq.bf16.partialorder %v460_v1, %v3057_v12  ;;  %vm665_vm12 = vcmp.eq.bf16.partialorder %v457_v2, %v3059_v13  ;;  %vm669_vm13 = vcmp.eq.bf16.partialorder %v461_v3, %v3059_v13 }
 0x149   : > { %2723 = vmatprep.subr.msk.bf16.mxu1 %vm2722_vm9, %v2958_v39  ;;  %vm2660_vm14 = vmpackc.low %vm3569_vm6, %vm3565_vm5  ;;  %v792_v8 = vsel %vm664_vm10, 65537, %v2957_v16  ;;  %v796_v9 = vsel %vm668_vm11, 65537, %v2957_v16  ;;  %v793_v10 = vsel %vm665_vm12, 65537, %v2957_v16  ;;  %v797_v11 = vsel %vm669_vm13, 65537, %v2957_v16 }
 0x14a   : > { %2661 = vmatpush1.bf16.msk.msra.mxu0 %vm2660_vm14, %v2958_v39  ;;  %vm2724_vm15 = vmpackc.low %vm3577_vm8, %vm3573_vm7  ;;  %v1009_v17 = vunpack.c.h.b16 %v792_v8  ;;  %v1017_v18 = vunpack.c.h.b16 %v796_v9  ;;  %v1011_v19 = vunpack.c.h.b16 %v793_v10  ;;  %v1019_v20 = vunpack.c.h.b16 %v797_v11 }
 0x14b   : > { %2725 = vmatpush1.bf16.msk.msra.mxu1 %vm2724_vm15, %v2958_v39  ;;  %v1008_v23 = vunpack.c.l.b16 %v792_v8  ;;  %v1016_v24 = vunpack.c.l.b16 %v796_v9  ;;  %v1010_v25 = vunpack.c.l.b16 %v793_v10  ;;  %v1018_v26 = vunpack.c.l.b16 %v797_v11  ;;  %v379_v8 = vld [vmem:[%s4703_s1 + $0x58] sm:$0xff] }
 0x14c   : > { %vm1265_vm1 = vcmp.ne.s32.totalorder %v1009_v17, 0  ;;  %vm1273_vm2 = vcmp.ne.s32.totalorder %v1017_v18, 0  ;;  %vm1267_vm3 = vcmp.ne.s32.totalorder %v1011_v19, 0  ;;  %vm1275_vm4 = vcmp.ne.s32.totalorder %v1019_v20, 0  ;;  %v383_v11 = vld [vmem:[%s4703_s1 + $0x78] sm:$0xff] }
 0x14d   : > { %vm2662_vm5 = vmpackc.low %vm1273_vm2, %vm1265_vm1  ;;  %vm3613_vm6 = vcmp.ne.s32.totalorder %v1008_v23, 0  ;;  %vm3617_vm7 = vcmp.ne.s32.totalorder %v1016_v24, 0  ;;  %vm3621_vm8 = vcmp.ne.s32.totalorder %v1010_v25, 0  ;;  %vm3625_vm9 = vcmp.ne.s32.totalorder %v1018_v26, 0  ;;  %v488_v26 = vld [vmem:[%s4703_s1 + $0x3c0] sm:$0xff] }
 0x14e   : > { %2663 = vmatprep.subr.msk.bf16.mxu0 %vm2662_vm5, %v2958_v39  ;;  %vm2726_vm10 = vmpackc.low %vm1275_vm4, %vm1267_vm3  ;;  %vm672_vm11 = vcmp.eq.bf16.partialorder %v464_v21, %v3057_v12  ;;  %vm676_vm12 = vcmp.eq.bf16.partialorder %v468_v28, %v3057_v12  ;;  %vm673_vm13 = vcmp.eq.bf16.partialorder %v465_v29, %v3059_v13  ;;  %vm677_vm14 = vcmp.eq.bf16.partialorder %v469_v30, %v3059_v13 }
 0x14f   : > { %2727 = vmatprep.subr.msk.bf16.mxu1 %vm2726_vm10, %v2958_v39  ;;  %vm2664_vm15 = vmpackc.low %vm3617_vm7, %vm3613_vm6  ;;  %v800_v35 = vsel %vm672_vm11, 65537, %v2957_v16  ;;  %v804_v36 = vsel %vm676_vm12, 65537, %v2957_v16  ;;  %v801_v37 = vsel %vm673_vm13, 65537, %v2957_v16  ;;  %v805_v38 = vsel %vm677_vm14, 65537, %v2957_v16 }
 0x150   : > { %2665 = vmatpush1.bf16.msk.msra.mxu0 %vm2664_vm15, %v2958_v39  ;;  %vm2728_vm1 = vmpackc.low %vm3625_vm9, %vm3621_vm8  ;;  %v1025_v40 = vunpack.c.h.b16 %v800_v35  ;;  %v1033_v41 = vunpack.c.h.b16 %v804_v36  ;;  %v1027_v42 = vunpack.c.h.b16 %v801_v37  ;;  %v1035_v43 = vunpack.c.h.b16 %v805_v38 }
 0x151   : > { %2729 = vmatpush1.bf16.msk.msra.mxu1 %vm2728_vm1, %v2958_v39  ;;  %v1024_v45 = vunpack.c.l.b16 %v800_v35  ;;  %v1032_v46 = vunpack.c.l.b16 %v804_v36  ;;  %v1026_v47 = vunpack.c.l.b16 %v801_v37  ;;  %v1034_v48 = vunpack.c.l.b16 %v805_v38  ;;  %v391_v38 = vld [vmem:[%s4703_s1 + $0xb8] sm:$0xff] }
 0x152   : > { %vm1281_vm2 = vcmp.ne.s32.totalorder %v1025_v40, 0  ;;  %vm1289_vm3 = vcmp.ne.s32.totalorder %v1033_v41, 0  ;;  %vm1283_vm4 = vcmp.ne.s32.totalorder %v1027_v42, 0  ;;  %vm1291_vm5 = vcmp.ne.s32.totalorder %v1035_v43, 0 }
 0x153   : > { %vm2666_vm6 = vmpackc.low %vm1289_vm3, %vm1281_vm2  ;;  %vm3661_vm7 = vcmp.ne.s32.totalorder %v1024_v45, 0  ;;  %vm3665_vm8 = vcmp.ne.s32.totalorder %v1032_v46, 0  ;;  %vm3669_vm9 = vcmp.ne.s32.totalorder %v1026_v47, 0  ;;  %vm3673_vm10 = vcmp.ne.s32.totalorder %v1034_v48, 0  ;;  %v370_v46 = vld [vmem:[%s4703_s1 + $0x10] sm:$0xff] }
 0x154   : > { %2667 = vmatprep.subr.msk.bf16.mxu0 %vm2666_vm6, %v2958_v39  ;;  %vm2730_vm11 = vmpackc.low %vm1291_vm5, %vm1283_vm4  ;;  %vm680_vm12 = vcmp.eq.bf16.partialorder %v472_v44, %v3057_v12  ;;  %vm684_vm13 = vcmp.eq.bf16.partialorder %v476_v49, %v3057_v12  ;;  %vm681_vm14 = vcmp.eq.bf16.partialorder %v473_v50, %v3059_v13  ;;  %vm685_vm15 = vcmp.eq.bf16.partialorder %v477_v51, %v3059_v13  ;;  %v374_v51 = vld [vmem:[%s4703_s1 + $0x30] sm:$0xff] }
 0x155   : > { %2731 = vmatprep.subr.msk.bf16.mxu1 %vm2730_vm11, %v2958_v39  ;;  %vm2668_vm1 = vmpackc.low %vm3665_vm8, %vm3661_vm7  ;;  %v808_v56 = vsel %vm680_vm12, 65537, %v2957_v16  ;;  %v812_v57 = vsel %vm684_vm13, 65537, %v2957_v16  ;;  %v809_v58 = vsel %vm681_vm14, 65537, %v2957_v16  ;;  %v813_v59 = vsel %vm685_vm15, 65537, %v2957_v16 }
 0x156   : > { %2669 = vmatpush1.bf16.msk.msra.mxu0 %vm2668_vm1, %v2958_v39  ;;  %vm2732_vm2 = vmpackc.low %vm3673_vm10, %vm3669_vm9  ;;  %v1041_v60 = vunpack.c.h.b16 %v808_v56  ;;  %v1049_v61 = vunpack.c.h.b16 %v812_v57  ;;  %v1043_v62 = vunpack.c.h.b16 %v809_v58  ;;  %v1051_v63 = vunpack.c.h.b16 %v813_v59 }
 0x157   : > { %2733 = vmatpush1.bf16.msk.msra.mxu1 %vm2732_vm2, %v2958_v39  ;;  %v1040_v1 = vunpack.c.l.b16 %v808_v56  ;;  %v1048_v2 = vunpack.c.l.b16 %v812_v57  ;;  %v1042_v3 = vunpack.c.l.b16 %v809_v58  ;;  %v1050_v4 = vunpack.c.l.b16 %v813_v59 }
 0x158   : > { %vm1297_vm3 = vcmp.ne.s32.totalorder %v1041_v60, 0  ;;  %vm1305_vm4 = vcmp.ne.s32.totalorder %v1049_v61, 0  ;;  %vm1299_vm5 = vcmp.ne.s32.totalorder %v1043_v62, 0  ;;  %vm1307_vm6 = vcmp.ne.s32.totalorder %v1051_v63, 0 }
 0x159   : > { %vm2670_vm7 = vmpackc.low %vm1305_vm4, %vm1297_vm3  ;;  %vm3709_vm8 = vcmp.ne.s32.totalorder %v1040_v1, 0  ;;  %vm3713_vm9 = vcmp.ne.s32.totalorder %v1048_v2, 0  ;;  %vm3717_vm10 = vcmp.ne.s32.totalorder %v1042_v3, 0  ;;  %vm3721_vm11 = vcmp.ne.s32.totalorder %v1050_v4, 0 }
 0x15a   : > { %2671 = vmatprep.subr.msk.bf16.mxu0 %vm2670_vm7, %v2958_v39  ;;  %vm2734_vm12 = vmpackc.low %vm1307_vm6, %vm1299_vm5  ;;  %vm688_vm13 = vcmp.eq.bf16.partialorder %v480_v0, %v3057_v12  ;;  %vm692_vm14 = vcmp.eq.bf16.partialorder %v484_v5, %v3057_v12  ;;  %vm689_vm15 = vcmp.eq.bf16.partialorder %v481_v6, %v3059_v13  ;;  %vm693_vm1 = vcmp.eq.bf16.partialorder %v485_v7, %v3059_v13  ;;  %v378_v6 = vld [vmem:[%s4703_s1 + $0x50] sm:$0xff] }
 0x15b   : > { %2735 = vmatprep.subr.msk.bf16.mxu1 %vm2734_vm12, %v2958_v39  ;;  %vm2672_vm2 = vmpackc.low %vm3713_vm9, %vm3709_vm8  ;;  %v816_v17 = vsel %vm688_vm13, 65537, %v2957_v16  ;;  %v820_v18 = vsel %vm692_vm14, 65537, %v2957_v16  ;;  %v817_v19 = vsel %vm689_vm15, 65537, %v2957_v16  ;;  %v821_v20 = vsel %vm693_vm1, 65537, %v2957_v16  ;;  %v382_v7 = vld [vmem:[%s4703_s1 + $0x70] sm:$0xff] }
 0x15c   : > { %2673 = vmatpush1.bf16.msk.msra.mxu0 %vm2672_vm2, %v2958_v39  ;;  %vm2736_vm3 = vmpackc.low %vm3721_vm11, %vm3717_vm10  ;;  %v1057_v21 = vunpack.c.h.b16 %v816_v17  ;;  %v1065_v23 = vunpack.c.h.b16 %v820_v18  ;;  %v1059_v24 = vunpack.c.h.b16 %v817_v19  ;;  %v1067_v25 = vunpack.c.h.b16 %v821_v20 }
 0x15d   : > { %2737 = vmatpush1.bf16.msk.msra.mxu1 %vm2736_vm3, %v2958_v39  ;;  %v1056_v28 = vunpack.c.l.b16 %v816_v17  ;;  %v1064_v29 = vunpack.c.l.b16 %v820_v18  ;;  %v1058_v30 = vunpack.c.l.b16 %v817_v19  ;;  %v1066_v31 = vunpack.c.l.b16 %v821_v20  ;;  %v2930_v17 = vld.sshfl [vmem:[%s4702_s0] sm:$0x33 pattern:$0x76325410]  ;;  %v386_v20 = vld [vmem:[%s4703_s1 + $0x90] sm:$0xff] }
 0x15e   : > { %vm1313_vm4 = vcmp.ne.s32.totalorder %v1057_v21, 0  ;;  %vm1321_vm5 = vcmp.ne.s32.totalorder %v1065_v23, 0  ;;  %vm1315_vm6 = vcmp.ne.s32.totalorder %v1059_v24, 0  ;;  %vm1323_vm7 = vcmp.ne.s32.totalorder %v1067_v25, 0 }
 0x15f   : > { %vm2674_vm8 = vmpackc.low %vm1321_vm5, %vm1313_vm4  ;;  %vm3757_vm9 = vcmp.ne.s32.totalorder %v1056_v28, 0  ;;  %vm3761_vm10 = vcmp.ne.s32.totalorder %v1064_v29, 0  ;;  %vm3765_vm11 = vcmp.ne.s32.totalorder %v1058_v30, 0  ;;  %vm3769_vm12 = vcmp.ne.s32.totalorder %v1066_v31, 0 }
 0x160   : > { %2675 = vmatprep.subr.msk.bf16.mxu0 %vm2674_vm8, %v2958_v39  ;;  %vm2738_vm13 = vmpackc.low %vm1323_vm7, %vm1315_vm6  ;;  %vm696_vm14 = vcmp.eq.bf16.partialorder %v488_v26, %v3057_v12  ;;  %vm700_vm15 = vcmp.eq.bf16.partialorder %v492_v32, %v3057_v12  ;;  %vm697_vm1 = vcmp.eq.bf16.partialorder %v489_v33, %v3059_v13  ;;  %vm701_vm2 = vcmp.eq.bf16.partialorder %v493_v34, %v3059_v13  ;;  %v390_v33 = vld [vmem:[%s4703_s1 + $0xb0] sm:$0xff] }
 0x161   : > { %2739 = vmatprep.subr.msk.bf16.mxu1 %vm2738_vm13, %v2958_v39  ;;  %vm2676_vm3 = vmpackc.low %vm3761_vm10, %vm3757_vm9  ;;  %v824_v40 = vsel %vm696_vm14, 65537, %v2957_v16  ;;  %v828_v41 = vsel %vm700_vm15, 65537, %v2957_v16  ;;  %v825_v42 = vsel %vm697_vm1, 65537, %v2957_v16  ;;  %v829_v43 = vsel %vm701_vm2, 65537, %v2957_v16 }
 0x162   : > { %2677 = vmatpush1.bf16.msk.msra.mxu0 %vm2676_vm3, %v2958_v39  ;;  %vm2740_vm4 = vmpackc.low %vm3769_vm12, %vm3765_vm11  ;;  %v1073_v12 = vunpack.c.h.b16 %v824_v40  ;;  %v1081_v13 = vunpack.c.h.b16 %v828_v41  ;;  %v1075_v44 = vunpack.c.h.b16 %v825_v42  ;;  %v1083_v45 = vunpack.c.h.b16 %v829_v43 }
 0x163   : > { %2741 = vmatpush1.bf16.msk.msra.mxu1 %vm2740_vm4, %v2958_v39  ;;  %v1072_v47 = vunpack.c.l.b16 %v824_v40  ;;  %v1080_v48 = vunpack.c.l.b16 %v828_v41  ;;  %v1074_v49 = vunpack.c.l.b16 %v825_v42  ;;  %v1082_v50 = vunpack.c.l.b16 %v829_v43  ;;  %v411_v40 = vld [vmem:[%s4703_s1 + $0x158] sm:$0xff] }
 0x164   : > { %vm1329_vm5 = vcmp.ne.s32.totalorder %v1073_v12, 0  ;;  %vm1337_vm6 = vcmp.ne.s32.totalorder %v1081_v13, 0  ;;  %vm1331_vm7 = vcmp.ne.s32.totalorder %v1075_v44, 0  ;;  %vm1339_vm8 = vcmp.ne.s32.totalorder %v1083_v45, 0 }
 0x165   : > { %vm2678_vm9 = vmpackc.low %vm1337_vm6, %vm1329_vm5  ;;  %vm3805_vm10 = vcmp.ne.s32.totalorder %v1072_v47, 0  ;;  %vm3809_vm11 = vcmp.ne.s32.totalorder %v1080_v48, 0  ;;  %vm3813_vm12 = vcmp.ne.s32.totalorder %v1074_v49, 0  ;;  %vm3817_vm13 = vcmp.ne.s32.totalorder %v1082_v50, 0 }
 0x166   : > { %2679 = vmatprep.subr.msk.bf16.mxu0 %vm2678_vm9, %v2958_v39  ;;  %vm2742_vm14 = vmpackc.low %vm1339_vm8, %vm1331_vm7  ;;  %vm578_vm15 = vcmp.eq.bf16.partialorder %v370_v46, %v3061_v14  ;;  %vm582_vm1 = vcmp.eq.bf16.partialorder %v374_v51, %v3061_v14  ;;  %vm579_vm2 = vcmp.eq.bf16.partialorder %v371_v52, %v3063_v15  ;;  %vm583_vm3 = vcmp.eq.bf16.partialorder %v375_v53, %v3063_v15  ;;  %v394_v46 = vld [vmem:[%s4703_s1 + $0xd0] sm:$0xff] }
 0x167   : > { %2743 = vmatprep.subr.msk.bf16.mxu1 %vm2742_vm14, %v2958_v39  ;;  %vm2680_vm4 = vmpackc.low %vm3809_vm11, %vm3805_vm10  ;;  %v706_v58 = vsel %vm578_vm15, 65537, %v2957_v16  ;;  %v710_v59 = vsel %vm582_vm1, 65537, %v2957_v16  ;;  %v707_v60 = vsel %vm579_vm2, 65537, %v2957_v16  ;;  %v711_v61 = vsel %vm583_vm3, 65537, %v2957_v16  ;;  %v398_v51 = vld [vmem:[%s4703_s1 + $0xf0] sm:$0xff] }
 0x168   : > { %2681 = vmatpush1.bf16.msk.msra.mxu0 %vm2680_vm4, %v2958_v39  ;;  %vm2744_vm5 = vmpackc.low %vm3817_vm13, %vm3813_vm12  ;;  %v836_v62 = vunpack.c.l.b16 %v706_v58  ;;  %v837_v63 = vunpack.c.h.b16 %v706_v58  ;;  %v844_v0 = vunpack.c.l.b16 %v710_v59  ;;  %v845_v1 = vunpack.c.h.b16 %v710_v59  ;;  %v399_v58 = vld [vmem:[%s4703_s1 + $0xf8] sm:$0xff] }
 0x169   : > { %2745 = vmatpush1.bf16.msk.msra.mxu1 %vm2744_vm5, %v2958_v39  ;;  %v838_v2 = vunpack.c.l.b16 %v707_v60  ;;  %v839_v3 = vunpack.c.h.b16 %v707_v60  ;;  %v846_v4 = vunpack.c.l.b16 %v711_v61  ;;  %v847_v5 = vunpack.c.h.b16 %v711_v61  ;;  %v419_v59 = vld [vmem:[%s4703_s1 + $0x198] sm:$0xff] }
 0x16a   : > { %vm1093_vm6 = vcmp.ne.s32.totalorder %v837_v63, 0  ;;  %vm1101_vm7 = vcmp.ne.s32.totalorder %v845_v1, 0  ;;  %vm3850_vm8 = vcmp.ne.s32.totalorder %v836_v62, 0  ;;  %vm3854_vm9 = vcmp.ne.s32.totalorder %v844_v0, 0 }
 0x16b   : > { %vm2746_vm10 = vmpackc.low %vm1101_vm7, %vm1093_vm6  ;;  %vm1095_vm11 = vcmp.ne.s32.totalorder %v839_v3, 0  ;;  %vm1103_vm12 = vcmp.ne.s32.totalorder %v847_v5, 0  ;;  %2029 = vmatmul.mubr.bf16.vlgmr.msra.gmra.mrb[0].mxu0 %v2930_v17  ;;  %vm3864_vm13 = vcmp.ne.s32.totalorder %v838_v2, 0  ;;  %vm3868_vm14 = vcmp.ne.s32.totalorder %v846_v4, 0  ;;  %v402_v3 = vld [vmem:[%s4703_s1 + $0x110] sm:$0xff] }
 0x16c   : > { %2747 = vmatprep.subr.msk.bf16.mxu0 %vm2746_vm10, %v2958_v39  ;;  %vm2810_vm15 = vmpackc.low %vm1103_vm12, %vm1095_vm11  ;;  %2070 = vmatmul.mubr.bf16.vlgmr.msra.gmra.mrb[0].mxu1 %v2930_v17  ;;  %vm586_vm1 = vcmp.eq.bf16.partialorder %v378_v6, %v3061_v14  ;;  %vm590_vm2 = vcmp.eq.bf16.partialorder %v382_v7, %v3061_v14  ;;  %vm587_vm3 = vcmp.eq.bf16.partialorder %v379_v8, %v3063_v15  ;;  %v406_v8 = vld [vmem:[%s4703_s1 + $0x130] sm:$0xff]  ;;  %v403_v17 = vld [vmem:[%s4703_s1 + $0x118] sm:$0xff] }
 0x16d   : > { %2811 = vmatprep.subr.msk.bf16.mxu1 %vm2810_vm15, %v2958_v39  ;;  %vm2748_vm4 = vmpackc.low %vm3854_vm9, %vm3850_vm8  ;;  %v714_v21 = vsel %vm586_vm1, 65537, %v2957_v16  ;;  %v718_v23 = vsel %vm590_vm2, 65537, %v2957_v16  ;;  %vm591_vm5 = vcmp.eq.bf16.partialorder %v383_v11, %v3063_v15  ;;  %v715_v24 = vsel %vm587_vm3, 65537, %v2957_v16  ;;  %2110 = vmatprep.mubr.bf16.mxu0 %v3031_v22 }
 0x16e   : > { %2749 = vmatpush1.bf16.msk.msra.mxu0 %vm2748_vm4, %v2958_v39  ;;  %vm2812_vm6 = vmpackc.low %vm3868_vm14, %vm3864_vm13  ;;  %v852_v25 = vunpack.c.l.b16 %v714_v21  ;;  %v853_v26 = vunpack.c.h.b16 %v714_v21  ;;  %v860_v28 = vunpack.c.l.b16 %v718_v23  ;;  %v861_v29 = vunpack.c.h.b16 %v718_v23  ;;  %2151 = vmatprep.mubr.bf16.mxu1 %v3031_v22  ;;  %v387_v22 = vld [vmem:[%s4703_s1 + $0x98] sm:$0xff] }
 0x16f   : > { %2813 = vmatpush1.bf16.msk.msra.mxu1 %vm2812_vm6, %v2958_v39  ;;  %v719_v30 = vsel %vm591_vm5, 65537, %v2957_v16  ;;  %v854_v31 = vunpack.c.l.b16 %v715_v24  ;;  %v855_v32 = vunpack.c.h.b16 %v715_v24  ;;  %vm594_vm7 = vcmp.eq.bf16.partialorder %v386_v20, %v3061_v14  ;;  %v407_v20 = vld [vmem:[%s4703_s1 + $0x138] sm:$0xff] }
 0x170   : > { %vm1109_vm8 = vcmp.ne.s32.totalorder %v853_v26, 0  ;;  %vm1117_vm9 = vcmp.ne.s32.totalorder %v861_v29, 0  ;;  %v862_v34 = vunpack.c.l.b16 %v719_v30  ;;  %v863_v35 = vunpack.c.h.b16 %v719_v30  ;;  %v427_v21 = vld [vmem:[%s4703_s1 + $0x1d8] sm:$0xff] }
 0x171   : > { %vm2750_vm10 = vmpackc.low %vm1117_vm9, %vm1109_vm8  ;;  %vm3904_vm11 = vcmp.ne.s32.totalorder %v855_v32, 0  ;;  %vm1108_vm12 = vcmp.ne.s32.totalorder %v852_v25, 0  ;;  %vm1116_vm13 = vcmp.ne.s32.totalorder %v860_v28, 0  ;;  %vm3908_vm14 = vcmp.ne.s32.totalorder %v854_v31, 0  ;;  %v410_v31 = vld [vmem:[%s4703_s1 + $0x150] sm:$0xff] }
 0x172   : > { %2751 = vmatprep.subr.msk.bf16.mxu0 %vm2750_vm10, %v2958_v39  ;;  %vm1119_vm15 = vcmp.ne.s32.totalorder %v863_v35, 0  ;;  %vm2752_vm1 = vmpackc.low %vm1116_vm13, %vm1108_vm12  ;;  %vm3916_vm2 = vcmp.ne.s32.totalorder %v862_v34, 0  ;;  %vm598_vm3 = vcmp.eq.bf16.partialorder %v390_v33, %v3061_v14  ;;  %v722_v41 = vsel %vm594_vm7, 65537, %v2957_v16 }
 0x173   : > { %vm2814_vm4 = vmpackc.low %vm1119_vm15, %vm3904_vm11  ;;  %2753 = vmatpush1.bf16.msk.msra.mxu0 %vm2752_vm1, %v2958_v39  ;;  %v726_v42 = vsel %vm598_vm3, 65537, %v2957_v16  ;;  %v868_v43 = vunpack.c.l.b16 %v722_v41  ;;  %v869_v12 = vunpack.c.h.b16 %v722_v41  ;;  %vm595_vm5 = vcmp.eq.bf16.partialorder %v387_v22, %v3063_v15  ;;  %v414_v22 = vld [vmem:[%s4703_s1 + $0x170] sm:$0xff] }
 0x174   : > { %2815 = vmatprep.subr.msk.bf16.mxu1 %vm2814_vm4, %v2958_v39  ;;  %vm2816_vm6 = vmpackc.low %vm3916_vm2, %vm3908_vm14  ;;  %v876_v13 = vunpack.c.l.b16 %v726_v42  ;;  %v877_v44 = vunpack.c.h.b16 %v726_v42  ;;  %vm599_vm7 = vcmp.eq.bf16.partialorder %v391_v38, %v3063_v15  ;;  %v723_v45 = vsel %vm595_vm5, 65537, %v2957_v16 }
 0x175   : > { %2817 = vmatpush1.bf16.msk.msra.mxu1 %vm2816_vm6, %v2958_v39  ;;  %vm3940_vm8 = vcmp.ne.s32.totalorder %v869_v12, 0  ;;  %v727_v48 = vsel %vm599_vm7, 65537, %v2957_v16  ;;  %v870_v49 = vunpack.c.l.b16 %v723_v45  ;;  %v871_v50 = vunpack.c.h.b16 %v723_v45  ;;  %v435_v12 = vld [vmem:[%s4703_s1 + $0x218] sm:$0xff] }
 0x176   : > { %vm1133_vm9 = vcmp.ne.s32.totalorder %v877_v44, 0  ;;  %v878_v52 = vunpack.c.l.b16 %v727_v48  ;;  %v879_v53 = vunpack.c.h.b16 %v727_v48  ;;  %vm3948_vm10 = vcmp.ne.s32.totalorder %v868_v43, 0  ;;  %v415_v43 = vld [vmem:[%s4703_s1 + $0x178] sm:$0xff] }
 0x177   : > { %vm2754_vm11 = vmpackc.low %vm1133_vm9, %vm3940_vm8  ;;  %vm3957_vm12 = vcmp.ne.s32.totalorder %v871_v50, 0  ;;  %vm1132_vm13 = vcmp.ne.s32.totalorder %v876_v13, 0  ;;  %vm3961_vm14 = vcmp.ne.s32.totalorder %v870_v49, 0  ;;  %vm602_vm15 = vcmp.eq.bf16.partialorder %v394_v46, %v3061_v14  ;;  %v418_v50 = vld [vmem:[%s4703_s1 + $0x190] sm:$0xff] }
 0x178   : > { %2755 = vmatprep.subr.msk.bf16.mxu0 %vm2754_vm11, %v2958_v39  ;;  %vm1135_vm1 = vcmp.ne.s32.totalorder %v879_v53, 0  ;;  %vm2756_vm2 = vmpackc.low %vm1132_vm13, %vm3948_vm10  ;;  %vm3972_vm3 = vcmp.ne.s32.totalorder %v878_v52, 0  ;;  %vm606_vm4 = vcmp.eq.bf16.partialorder %v398_v51, %v3061_v14  ;;  %v730_v60 = vsel %vm602_vm15, 65537, %v2957_v16 }
 0x179   : > { %vm2818_vm5 = vmpackc.low %vm1135_vm1, %vm3957_vm12  ;;  %2757 = vmatpush1.bf16.msk.msra.mxu0 %vm2756_vm2, %v2958_v39  ;;  %v734_v61 = vsel %vm606_vm4, 65537, %v2957_v16  ;;  %v884_v62 = vunpack.c.l.b16 %v730_v60  ;;  %v885_v63 = vunpack.c.h.b16 %v730_v60  ;;  %vm603_vm6 = vcmp.eq.bf16.partialorder %v395_v55, %v3063_v15  ;;  %v422_v55 = vld [vmem:[%s4703_s1 + $0x1b0] sm:$0xff] }
 0x17a   : > { %2819 = vmatprep.subr.msk.bf16.mxu1 %vm2818_vm5, %v2958_v39  ;;  %vm2820_vm7 = vmpackc.low %vm3972_vm3, %vm3961_vm14  ;;  %v892_v0 = vunpack.c.l.b16 %v734_v61  ;;  %v893_v1 = vunpack.c.h.b16 %v734_v61  ;;  %vm607_vm8 = vcmp.eq.bf16.partialorder %v399_v58, %v3063_v15  ;;  %v731_v2 = vsel %vm603_vm6, 65537, %v2957_v16 }
 0x17b   : > { %2821 = vmatpush1.bf16.msk.msra.mxu1 %vm2820_vm7, %v2958_v39  ;;  %vm3994_vm9 = vcmp.ne.s32.totalorder %v885_v63, 0  ;;  %v735_v5 = vsel %vm607_vm8, 65537, %v2957_v16  ;;  %v886_v6 = vunpack.c.l.b16 %v731_v2  ;;  %v887_v7 = vunpack.c.h.b16 %v731_v2  ;;  %v443_v63 = vld [vmem:[%s4703_s1 + $0x258] sm:$0xff] }
 0x17c   : > { %vm1149_vm10 = vcmp.ne.s32.totalorder %v893_v1, 0  ;;  %v894_v9 = vunpack.c.l.b16 %v735_v5  ;;  %v895_v10 = vunpack.c.h.b16 %v735_v5  ;;  %vm4002_vm11 = vcmp.ne.s32.totalorder %v884_v62, 0  ;;  %v423_v62 = vld [vmem:[%s4703_s1 + $0x1b8] sm:$0xff] }
 0x17d   : > { %vm2758_vm12 = vmpackc.low %vm1149_vm10, %vm3994_vm9  ;;  %vm4011_vm13 = vcmp.ne.s32.totalorder %v887_v7, 0  ;;  %vm1148_vm14 = vcmp.ne.s32.totalorder %v892_v0, 0  ;;  %vm4015_vm15 = vcmp.ne.s32.totalorder %v886_v6, 0  ;;  %vm610_vm1 = vcmp.eq.bf16.partialorder %v402_v3, %v3061_v14  ;;  %v426_v7 = vld [vmem:[%s4703_s1 + $0x1d0] sm:$0xff] }
 0x17e   : > { %2759 = vmatprep.subr.msk.bf16.mxu0 %vm2758_vm12, %v2958_v39  ;;  %vm1151_vm2 = vcmp.ne.s32.totalorder %v895_v10, 0  ;;  %vm2760_vm3 = vmpackc.low %vm1148_vm14, %vm4002_vm11  ;;  %vm4026_vm4 = vcmp.ne.s32.totalorder %v894_v9, 0  ;;  %vm614_vm5 = vcmp.eq.bf16.partialorder %v406_v8, %v3061_v14  ;;  %v738_v23 = vsel %vm610_vm1, 65537, %v2957_v16 }
 0x17f   : > { %vm2822_vm6 = vmpackc.low %vm1151_vm2, %vm4011_vm13  ;;  %2761 = vmatpush1.bf16.msk.msra.mxu0 %vm2760_vm3, %v2958_v39  ;;  %v742_v24 = vsel %vm614_vm5, 65537, %v2957_v16  ;;  %v900_v25 = vunpack.c.l.b16 %v738_v23  ;;  %v901_v26 = vunpack.c.h.b16 %v738_v23  ;;  %vm611_vm7 = vcmp.eq.bf16.partialorder %v403_v17, %v3063_v15  ;;  %v430_v17 = vld [vmem:[%s4703_s1 + $0x1f0] sm:$0xff] }
 0x180   : > { %2823 = vmatprep.subr.msk.bf16.mxu1 %vm2822_vm6, %v2958_v39  ;;  %vm2824_vm8 = vmpackc.low %vm4026_vm4, %vm4015_vm15  ;;  %v908_v28 = vunpack.c.l.b16 %v742_v24  ;;  %v909_v29 = vunpack.c.h.b16 %v742_v24  ;;  %vm615_vm9 = vcmp.eq.bf16.partialorder %v407_v20, %v3063_v15  ;;  %v739_v30 = vsel %vm611_vm7, 65537, %v2957_v16 }
 0x181   : > { %2825 = vmatpush1.bf16.msk.msra.mxu1 %vm2824_vm8, %v2958_v39  ;;  %vm4048_vm10 = vcmp.ne.s32.totalorder %v901_v26, 0  ;;  %v743_v33 = vsel %vm615_vm9, 65537, %v2957_v16  ;;  %v902_v34 = vunpack.c.l.b16 %v739_v30  ;;  %v903_v35 = vunpack.c.h.b16 %v739_v30  ;;  %v451_v26 = vld [vmem:[%s4703_s1 + $0x298] sm:$0xff] }
 0x182   : > { %vm1165_vm11 = vcmp.ne.s32.totalorder %v909_v29, 0  ;;  %v910_v36 = vunpack.c.l.b16 %v743_v33  ;;  %v911_v37 = vunpack.c.h.b16 %v743_v33  ;;  %vm4056_vm12 = vcmp.ne.s32.totalorder %v900_v25, 0  ;;  %v431_v25 = vld [vmem:[%s4703_s1 + $0x1f8] sm:$0xff] }
 0x183   : > { %vm2762_vm13 = vmpackc.low %vm1165_vm11, %vm4048_vm10  ;;  %vm4065_vm14 = vcmp.ne.s32.totalorder %v903_v35, 0  ;;  %vm1164_vm15 = vcmp.ne.s32.totalorder %v908_v28, 0  ;;  %vm4069_vm1 = vcmp.ne.s32.totalorder %v902_v34, 0  ;;  %vm618_vm2 = vcmp.eq.bf16.partialorder %v410_v31, %v3061_v14  ;;  %v434_v35 = vld [vmem:[%s4703_s1 + $0x210] sm:$0xff] }
 0x184   : > { %2763 = vmatprep.subr.msk.bf16.mxu0 %vm2762_vm13, %v2958_v39  ;;  %vm1167_vm3 = vcmp.ne.s32.totalorder %v911_v37, 0  ;;  %vm2764_vm4 = vmpackc.low %vm1164_vm15, %vm4056_vm12  ;;  %vm4080_vm5 = vcmp.ne.s32.totalorder %v910_v36, 0  ;;  %vm622_vm6 = vcmp.eq.bf16.partialorder %v414_v22, %v3061_v14  ;;  %v746_v13 = vsel %vm618_vm2, 65537, %v2957_v16 }
 0x185   : > { %vm2826_vm7 = vmpackc.low %vm1167_vm3, %vm4065_vm14  ;;  %2765 = vmatpush1.bf16.msk.msra.mxu0 %vm2764_vm4, %v2958_v39  ;;  %v750_v44 = vsel %vm622_vm6, 65537, %v2957_v16  ;;  %v916_v45 = vunpack.c.l.b16 %v746_v13  ;;  %v917_v46 = vunpack.c.h.b16 %v746_v13  ;;  %vm619_vm8 = vcmp.eq.bf16.partialorder %v411_v40, %v3063_v15  ;;  %v438_v40 = vld [vmem:[%s4703_s1 + $0x230] sm:$0xff] }
 0x186   : > { %2827 = vmatprep.subr.msk.bf16.mxu1 %vm2826_vm7, %v2958_v39  ;;  %vm2828_vm9 = vmpackc.low %vm4080_vm5, %vm4069_vm1  ;;  %v924_v47 = vunpack.c.l.b16 %v750_v44  ;;  %v925_v48 = vunpack.c.h.b16 %v750_v44  ;;  %vm623_vm10 = vcmp.eq.bf16.partialorder %v415_v43, %v3063_v15  ;;  %v747_v49 = vsel %vm619_vm8, 65537, %v2957_v16 }
 0x187   : > { %2829 = vmatpush1.bf16.msk.msra.mxu1 %vm2828_vm9, %v2958_v39  ;;  %vm4102_vm11 = vcmp.ne.s32.totalorder %v917_v46, 0  ;;  %v751_v52 = vsel %vm623_vm10, 65537, %v2957_v16  ;;  %v918_v53 = vunpack.c.l.b16 %v747_v49  ;;  %v919_v54 = vunpack.c.h.b16 %v747_v49  ;;  %v459_v46 = vld [vmem:[%s4703_s1 + $0x2d8] sm:$0xff] }
 0x188   : > { %vm1181_vm12 = vcmp.ne.s32.totalorder %v925_v48, 0  ;;  %v926_v56 = vunpack.c.l.b16 %v751_v52  ;;  %v927_v57 = vunpack.c.h.b16 %v751_v52  ;;  %vm4110_vm13 = vcmp.ne.s32.totalorder %v916_v45, 0  ;;  %v439_v45 = vld [vmem:[%s4703_s1 + $0x238] sm:$0xff] }
 0x189   : > { %vm2766_vm14 = vmpackc.low %vm1181_vm12, %vm4102_vm11  ;;  %vm4119_vm15 = vcmp.ne.s32.totalorder %v919_v54, 0  ;;  %vm1180_vm1 = vcmp.ne.s32.totalorder %v924_v47, 0  ;;  %vm4123_vm2 = vcmp.ne.s32.totalorder %v918_v53, 0  ;;  %vm626_vm3 = vcmp.eq.bf16.partialorder %v418_v50, %v3061_v14  ;;  %v442_v54 = vld [vmem:[%s4703_s1 + $0x250] sm:$0xff] }
 0x18a   : > { %2767 = vmatprep.subr.msk.bf16.mxu0 %vm2766_vm14, %v2958_v39  ;;  %vm1183_vm4 = vcmp.ne.s32.totalorder %v927_v57, 0  ;;  %vm2768_vm5 = vmpackc.low %vm1180_vm1, %vm4110_vm13  ;;  %vm4134_vm6 = vcmp.ne.s32.totalorder %v926_v56, 0  ;;  %vm630_vm7 = vcmp.eq.bf16.partialorder %v422_v55, %v3061_v14  ;;  %v754_v0 = vsel %vm626_vm3, 65537, %v2957_v16 }
 0x18b   : > { %vm2830_vm8 = vmpackc.low %vm1183_vm4, %vm4119_vm15  ;;  %2769 = vmatpush1.bf16.msk.msra.mxu0 %vm2768_vm5, %v2958_v39  ;;  %v758_v1 = vsel %vm630_vm7, 65537, %v2957_v16  ;;  %v932_v2 = vunpack.c.l.b16 %v754_v0  ;;  %v933_v3 = vunpack.c.h.b16 %v754_v0  ;;  %vm627_vm9 = vcmp.eq.bf16.partialorder %v419_v59, %v3063_v15  ;;  %v446_v59 = vld [vmem:[%s4703_s1 + $0x270] sm:$0xff] }
 0x18c   : > { %2831 = vmatprep.subr.msk.bf16.mxu1 %vm2830_vm8, %v2958_v39  ;;  %vm2832_vm10 = vmpackc.low %vm4134_vm6, %vm4123_vm2  ;;  %v940_v4 = vunpack.c.l.b16 %v758_v1  ;;  %v941_v5 = vunpack.c.h.b16 %v758_v1  ;;  %vm631_vm11 = vcmp.eq.bf16.partialorder %v423_v62, %v3063_v15  ;;  %v755_v6 = vsel %vm627_vm9, 65537, %v2957_v16 }
 0x18d   : > { %2833 = vmatpush1.bf16.msk.msra.mxu1 %vm2832_vm10, %v2958_v39  ;;  %vm4156_vm12 = vcmp.ne.s32.totalorder %v933_v3, 0  ;;  %v759_v9 = vsel %vm631_vm11, 65537, %v2957_v16  ;;  %v934_v10 = vunpack.c.l.b16 %v755_v6  ;;  %v935_v11 = vunpack.c.h.b16 %v755_v6  ;;  %v467_v3 = vld [vmem:[%s4703_s1 + $0x318] sm:$0xff] }
 0x18e   : > { %vm1197_vm13 = vcmp.ne.s32.totalorder %v941_v5, 0  ;;  %v942_v18 = vunpack.c.l.b16 %v759_v9  ;;  %v943_v19 = vunpack.c.h.b16 %v759_v9  ;;  %vm4164_vm14 = vcmp.ne.s32.totalorder %v932_v2, 0  ;;  %v447_v2 = vld [vmem:[%s4703_s1 + $0x278] sm:$0xff] }
 0x18f   : > { %vm2770_vm15 = vmpackc.low %vm1197_vm13, %vm4156_vm12  ;;  %vm4173_vm1 = vcmp.ne.s32.totalorder %v935_v11, 0  ;;  %vm1196_vm2 = vcmp.ne.s32.totalorder %v940_v4, 0  ;;  %vm4177_vm3 = vcmp.ne.s32.totalorder %v934_v10, 0  ;;  %vm634_vm4 = vcmp.eq.bf16.partialorder %v426_v7, %v3061_v14  ;;  %v450_v11 = vld [vmem:[%s4703_s1 + $0x290] sm:$0xff] }
 0x190   : > { %2771 = vmatprep.subr.msk.bf16.mxu0 %vm2770_vm15, %v2958_v39  ;;  %vm1199_vm5 = vcmp.ne.s32.totalorder %v943_v19, 0  ;;  %vm2772_vm6 = vmpackc.low %vm1196_vm2, %vm4164_vm14  ;;  %vm4188_vm7 = vcmp.ne.s32.totalorder %v942_v18, 0  ;;  %vm638_vm8 = vcmp.eq.bf16.partialorder %v430_v17, %v3061_v14  ;;  %v762_v28 = vsel %vm634_vm4, 65537, %v2957_v16 }
 0x191   : > { %vm2834_vm9 = vmpackc.low %vm1199_vm5, %vm4173_vm1  ;;  %2773 = vmatpush1.bf16.msk.msra.mxu0 %vm2772_vm6, %v2958_v39  ;;  %v766_v29 = vsel %vm638_vm8, 65537, %v2957_v16  ;;  %v948_v30 = vunpack.c.l.b16 %v762_v28  ;;  %v949_v31 = vunpack.c.h.b16 %v762_v28  ;;  %vm635_vm10 = vcmp.eq.bf16.partialorder %v427_v21, %v3063_v15  ;;  %v454_v21 = vld [vmem:[%s4703_s1 + $0x2b0] sm:$0xff] }
 0x192   : > { %2835 = vmatprep.subr.msk.bf16.mxu1 %vm2834_vm9, %v2958_v39  ;;  %vm2836_vm11 = vmpackc.low %vm4188_vm7, %vm4177_vm3  ;;  %v956_v32 = vunpack.c.l.b16 %v766_v29  ;;  %v957_v33 = vunpack.c.h.b16 %v766_v29  ;;  %vm639_vm12 = vcmp.eq.bf16.partialorder %v431_v25, %v3063_v15  ;;  %v763_v34 = vsel %vm635_vm10, 65537, %v2957_v16 }
 0x193   : > { %2837 = vmatpush1.bf16.msk.msra.mxu1 %vm2836_vm11, %v2958_v39  ;;  %vm4210_vm13 = vcmp.ne.s32.totalorder %v949_v31, 0  ;;  %v767_v36 = vsel %vm639_vm12, 65537, %v2957_v16  ;;  %v950_v37 = vunpack.c.l.b16 %v763_v34  ;;  %v951_v38 = vunpack.c.h.b16 %v763_v34  ;;  %v475_v31 = vld [vmem:[%s4703_s1 + $0x358] sm:$0xff] }
 0x194   : > { %vm1213_vm14 = vcmp.ne.s32.totalorder %v957_v33, 0  ;;  %v958_v41 = vunpack.c.l.b16 %v767_v36  ;;  %v959_v42 = vunpack.c.h.b16 %v767_v36  ;;  %vm4218_vm15 = vcmp.ne.s32.totalorder %v948_v30, 0  ;;  %v455_v30 = vld [vmem:[%s4703_s1 + $0x2b8] sm:$0xff] }
 0x195   : > { %vm2774_vm1 = vmpackc.low %vm1213_vm14, %vm4210_vm13  ;;  %vm4227_vm2 = vcmp.ne.s32.totalorder %v951_v38, 0  ;;  %vm1212_vm3 = vcmp.ne.s32.totalorder %v956_v32, 0  ;;  %vm4231_vm4 = vcmp.ne.s32.totalorder %v950_v37, 0  ;;  %vm642_vm5 = vcmp.eq.bf16.partialorder %v434_v35, %v3061_v14  ;;  %v458_v38 = vld [vmem:[%s4703_s1 + $0x2d0] sm:$0xff] }
 0x196   : > { %2775 = vmatprep.subr.msk.bf16.mxu0 %vm2774_vm1, %v2958_v39  ;;  %vm1215_vm6 = vcmp.ne.s32.totalorder %v959_v42, 0  ;;  %vm2776_vm7 = vmpackc.low %vm1212_vm3, %vm4218_vm15  ;;  %vm4242_vm8 = vcmp.ne.s32.totalorder %v958_v41, 0  ;;  %vm646_vm9 = vcmp.eq.bf16.partialorder %v438_v40, %v3061_v14  ;;  %v770_v47 = vsel %vm642_vm5, 65537, %v2957_v16 }
 0x197   : > { %vm2838_vm10 = vmpackc.low %vm1215_vm6, %vm4227_vm2  ;;  %2777 = vmatpush1.bf16.msk.msra.mxu0 %vm2776_vm7, %v2958_v39  ;;  %v774_v48 = vsel %vm646_vm9, 65537, %v2957_v16  ;;  %v964_v49 = vunpack.c.l.b16 %v770_v47  ;;  %v965_v50 = vunpack.c.h.b16 %v770_v47  ;;  %vm643_vm11 = vcmp.eq.bf16.partialorder %v435_v12, %v3063_v15  ;;  %v462_v12 = vld [vmem:[%s4703_s1 + $0x2f0] sm:$0xff] }
 0x198   : > { %2839 = vmatprep.subr.msk.bf16.mxu1 %vm2838_vm10, %v2958_v39  ;;  %vm2840_vm12 = vmpackc.low %vm4242_vm8, %vm4231_vm4  ;;  %v972_v51 = vunpack.c.l.b16 %v774_v48  ;;  %v973_v52 = vunpack.c.h.b16 %v774_v48  ;;  %vm647_vm13 = vcmp.eq.bf16.partialorder %v439_v45, %v3063_v15  ;;  %v771_v53 = vsel %vm643_vm11, 65537, %v2957_v16 }
 0x199   : > { %2841 = vmatpush1.bf16.msk.msra.mxu1 %vm2840_vm12, %v2958_v39  ;;  %vm4264_vm14 = vcmp.ne.s32.totalorder %v965_v50, 0  ;;  %v775_v56 = vsel %vm647_vm13, 65537, %v2957_v16  ;;  %v966_v57 = vunpack.c.l.b16 %v771_v53  ;;  %v967_v58 = vunpack.c.h.b16 %v771_v53  ;;  %v483_v50 = vld [vmem:[%s4703_s1 + $0x398] sm:$0xff] }
 0x19a   : > { %vm1229_vm15 = vcmp.ne.s32.totalorder %v973_v52, 0  ;;  %v974_v60 = vunpack.c.l.b16 %v775_v56  ;;  %v975_v61 = vunpack.c.h.b16 %v775_v56  ;;  %vm4272_vm1 = vcmp.ne.s32.totalorder %v964_v49, 0  ;;  %v463_v49 = vld [vmem:[%s4703_s1 + $0x2f8] sm:$0xff] }
 0x19b   : > { %vm2778_vm2 = vmpackc.low %vm1229_vm15, %vm4264_vm14  ;;  %vm4281_vm3 = vcmp.ne.s32.totalorder %v967_v58, 0  ;;  %vm1228_vm4 = vcmp.ne.s32.totalorder %v972_v51, 0  ;;  %vm4285_vm5 = vcmp.ne.s32.totalorder %v966_v57, 0  ;;  %vm650_vm6 = vcmp.eq.bf16.partialorder %v442_v54, %v3061_v14  ;;  %v466_v58 = vld [vmem:[%s4703_s1 + $0x310] sm:$0xff] }
 0x19c   : > { %2779 = vmatprep.subr.msk.bf16.mxu0 %vm2778_vm2, %v2958_v39  ;;  %vm1231_vm7 = vcmp.ne.s32.totalorder %v975_v61, 0  ;;  %vm2780_vm8 = vmpackc.low %vm1228_vm4, %vm4272_vm1  ;;  %vm4296_vm9 = vcmp.ne.s32.totalorder %v974_v60, 0  ;;  %vm654_vm10 = vcmp.eq.bf16.partialorder %v446_v59, %v3061_v14  ;;  %v778_v4 = vsel %vm650_vm6, 65537, %v2957_v16 }
 0x19d   : > { %vm2842_vm11 = vmpackc.low %vm1231_vm7, %vm4281_vm3  ;;  %2781 = vmatpush1.bf16.msk.msra.mxu0 %vm2780_vm8, %v2958_v39  ;;  %v782_v5 = vsel %vm654_vm10, 65537, %v2957_v16  ;;  %v980_v6 = vunpack.c.l.b16 %v778_v4  ;;  %v981_v7 = vunpack.c.h.b16 %v778_v4  ;;  %vm651_vm12 = vcmp.eq.bf16.partialorder %v443_v63, %v3063_v15  ;;  %v470_v63 = vld [vmem:[%s4703_s1 + $0x330] sm:$0xff] }
 0x19e   : > { %2843 = vmatprep.subr.msk.bf16.mxu1 %vm2842_vm11, %v2958_v39  ;;  %vm2844_vm13 = vmpackc.low %vm4296_vm9, %vm4285_vm5  ;;  %v988_v8 = vunpack.c.l.b16 %v782_v5  ;;  %v989_v9 = vunpack.c.h.b16 %v782_v5  ;;  %vm655_vm14 = vcmp.eq.bf16.partialorder %v447_v2, %v3063_v15  ;;  %v779_v10 = vsel %vm651_vm12, 65537, %v2957_v16 }
 0x19f   : > { %2845 = vmatpush1.bf16.msk.msra.mxu1 %vm2844_vm13, %v2958_v39  ;;  %vm4318_vm15 = vcmp.ne.s32.totalorder %v981_v7, 0  ;;  %v783_v18 = vsel %vm655_vm14, 65537, %v2957_v16  ;;  %v982_v19 = vunpack.c.l.b16 %v779_v10  ;;  %v983_v20 = vunpack.c.h.b16 %v779_v10  ;;  %v491_v7 = vld [vmem:[%s4703_s1 + $0x3d8] sm:$0xff] }
 0x1a0   : > { %vm1245_vm1 = vcmp.ne.s32.totalorder %v989_v9, 0  ;;  %v990_v23 = vunpack.c.l.b16 %v783_v18  ;;  %v991_v24 = vunpack.c.h.b16 %v783_v18  ;;  %vm4326_vm2 = vcmp.ne.s32.totalorder %v980_v6, 0  ;;  %v471_v6 = vld [vmem:[%s4703_s1 + $0x338] sm:$0xff] }
 0x1a1   : > { %vm2782_vm3 = vmpackc.low %vm1245_vm1, %vm4318_vm15  ;;  %vm4335_vm4 = vcmp.ne.s32.totalorder %v983_v20, 0  ;;  %vm1244_vm5 = vcmp.ne.s32.totalorder %v988_v8, 0  ;;  %vm4339_vm6 = vcmp.ne.s32.totalorder %v982_v19, 0  ;;  %vm658_vm7 = vcmp.eq.bf16.partialorder %v450_v11, %v3061_v14  ;;  %v474_v20 = vld [vmem:[%s4703_s1 + $0x350] sm:$0xff] }
 0x1a2   : > { %2783 = vmatprep.subr.msk.bf16.mxu0 %vm2782_vm3, %v2958_v39  ;;  %vm1247_vm8 = vcmp.ne.s32.totalorder %v991_v24, 0  ;;  %vm2784_vm9 = vmpackc.low %vm1244_vm5, %vm4326_vm2  ;;  %vm4350_vm10 = vcmp.ne.s32.totalorder %v990_v23, 0  ;;  %vm662_vm11 = vcmp.eq.bf16.partialorder %v454_v21, %v3061_v14  ;;  %v786_v32 = vsel %vm658_vm7, 65537, %v2957_v16 }
 0x1a3   : > { %vm2846_vm12 = vmpackc.low %vm1247_vm8, %vm4335_vm4  ;;  %2785 = vmatpush1.bf16.msk.msra.mxu0 %vm2784_vm9, %v2958_v39  ;;  %v790_v33 = vsel %vm662_vm11, 65537, %v2957_v16  ;;  %v996_v34 = vunpack.c.l.b16 %v786_v32  ;;  %v997_v35 = vunpack.c.h.b16 %v786_v32  ;;  %vm659_vm13 = vcmp.eq.bf16.partialorder %v451_v26, %v3063_v15  ;;  %v478_v26 = vld [vmem:[%s4703_s1 + $0x370] sm:$0xff] }
 0x1a4   : > { %2847 = vmatprep.subr.msk.bf16.mxu1 %vm2846_vm12, %v2958_v39  ;;  %vm2848_vm14 = vmpackc.low %vm4350_vm10, %vm4339_vm6  ;;  %v1004_v22 = vunpack.c.l.b16 %v790_v33  ;;  %v1005_v36 = vunpack.c.h.b16 %v790_v33  ;;  %vm663_vm15 = vcmp.eq.bf16.partialorder %v455_v30, %v3063_v15  ;;  %v787_v37 = vsel %vm659_vm13, 65537, %v2957_v16 }
 0x1a5   : > { %2849 = vmatpush1.bf16.msk.msra.mxu1 %vm2848_vm14, %v2958_v39  ;;  %vm4372_vm1 = vcmp.ne.s32.totalorder %v997_v35, 0  ;;  %v791_v41 = vsel %vm663_vm15, 65537, %v2957_v16  ;;  %v998_v42 = vunpack.c.l.b16 %v787_v37  ;;  %v999_v43 = vunpack.c.h.b16 %v787_v37 }
 0x1a6   : > { %vm1261_vm2 = vcmp.ne.s32.totalorder %v1005_v36, 0  ;;  %v1006_v13 = vunpack.c.l.b16 %v791_v41  ;;  %v1007_v44 = vunpack.c.h.b16 %v791_v41  ;;  %vm4380_vm3 = vcmp.ne.s32.totalorder %v996_v34, 0  ;;  %v479_v34 = vld [vmem:[%s4703_s1 + $0x378] sm:$0xff] }
 0x1a7   : > { %vm2786_vm4 = vmpackc.low %vm1261_vm2, %vm4372_vm1  ;;  %vm4389_vm5 = vcmp.ne.s32.totalorder %v999_v43, 0  ;;  %vm1260_vm6 = vcmp.ne.s32.totalorder %v1004_v22, 0  ;;  %vm4393_vm7 = vcmp.ne.s32.totalorder %v998_v42, 0  ;;  %vm666_vm8 = vcmp.eq.bf16.partialorder %v458_v38, %v3061_v14  ;;  %v482_v43 = vld [vmem:[%s4703_s1 + $0x390] sm:$0xff] }
 0x1a8   : > { %2787 = vmatprep.subr.msk.bf16.mxu0 %vm2786_vm4, %v2958_v39  ;;  %vm1263_vm9 = vcmp.ne.s32.totalorder %v1007_v44, 0  ;;  %vm2788_vm10 = vmpackc.low %vm1260_vm6, %vm4380_vm3  ;;  %vm4404_vm11 = vcmp.ne.s32.totalorder %v1006_v13, 0  ;;  %vm670_vm12 = vcmp.eq.bf16.partialorder %v462_v12, %v3061_v14  ;;  %v794_v51 = vsel %vm666_vm8, 65537, %v2957_v16 }
 0x1a9   : > { %vm2850_vm13 = vmpackc.low %vm1263_vm9, %vm4389_vm5  ;;  %2789 = vmatpush1.bf16.msk.msra.mxu0 %vm2788_vm10, %v2958_v39  ;;  %v798_v52 = vsel %vm670_vm12, 65537, %v2957_v16  ;;  %v1012_v53 = vunpack.c.l.b16 %v794_v51  ;;  %v1013_v54 = vunpack.c.h.b16 %v794_v51  ;;  %vm667_vm14 = vcmp.eq.bf16.partialorder %v459_v46, %v3063_v15  ;;  %v486_v46 = vld [vmem:[%s4703_s1 + $0x3b0] sm:$0xff] }
 0x1aa   : > { %2851 = vmatprep.subr.msk.bf16.mxu1 %vm2850_vm13, %v2958_v39  ;;  %vm2852_vm15 = vmpackc.low %vm4404_vm11, %vm4393_vm7  ;;  %v1020_v55 = vunpack.c.l.b16 %v798_v52  ;;  %v1021_v56 = vunpack.c.h.b16 %v798_v52  ;;  %vm671_vm1 = vcmp.eq.bf16.partialorder %v463_v49, %v3063_v15  ;;  %v795_v57 = vsel %vm667_vm14, 65537, %v2957_v16 }
 0x1ab   : > { %2853 = vmatpush1.bf16.msk.msra.mxu1 %vm2852_vm15, %v2958_v39  ;;  %vm4426_vm2 = vcmp.ne.s32.totalorder %v1013_v54, 0  ;;  %v799_v60 = vsel %vm671_vm1, 65537, %v2957_v16  ;;  %v1014_v61 = vunpack.c.l.b16 %v795_v57  ;;  %v1015_v62 = vunpack.c.h.b16 %v795_v57 }
 0x1ac   : > { %vm1277_vm3 = vcmp.ne.s32.totalorder %v1021_v56, 0  ;;  %v1022_v0 = vunpack.c.l.b16 %v799_v60  ;;  %v1023_v1 = vunpack.c.h.b16 %v799_v60  ;;  %vm4434_vm4 = vcmp.ne.s32.totalorder %v1012_v53, 0  ;;  %v487_v53 = vld [vmem:[%s4703_s1 + $0x3b8] sm:$0xff] }
 0x1ad   : > { %vm2790_vm5 = vmpackc.low %vm1277_vm3, %vm4426_vm2  ;;  %vm4443_vm6 = vcmp.ne.s32.totalorder %v1015_v62, 0  ;;  %vm1276_vm7 = vcmp.ne.s32.totalorder %v1020_v55, 0  ;;  %vm4447_vm8 = vcmp.ne.s32.totalorder %v1014_v61, 0  ;;  %vm674_vm9 = vcmp.eq.bf16.partialorder %v466_v58, %v3061_v14  ;;  %v490_v62 = vld [vmem:[%s4703_s1 + $0x3d0] sm:$0xff] }
 0x1ae   : > { %2791 = vmatprep.subr.msk.bf16.mxu0 %vm2790_vm5, %v2958_v39  ;;  %vm1279_vm10 = vcmp.ne.s32.totalorder %v1023_v1, 0  ;;  %vm2792_vm11 = vmpackc.low %vm1276_vm7, %vm4434_vm4  ;;  %vm4458_vm12 = vcmp.ne.s32.totalorder %v1022_v0, 0  ;;  %vm678_vm13 = vcmp.eq.bf16.partialorder %v470_v63, %v3061_v14  ;;  %v802_v8 = vsel %vm674_vm9, 65537, %v2957_v16 }
 0x1af   : > { %vm2854_vm14 = vmpackc.low %vm1279_vm10, %vm4443_vm6  ;;  %2793 = vmatpush1.bf16.msk.msra.mxu0 %vm2792_vm11, %v2958_v39  ;;  %v806_v9 = vsel %vm678_vm13, 65537, %v2957_v16  ;;  %v1028_v10 = vunpack.c.l.b16 %v802_v8  ;;  %v1029_v11 = vunpack.c.h.b16 %v802_v8  ;;  %vm675_vm15 = vcmp.eq.bf16.partialorder %v467_v3, %v3063_v15  ;;  %v494_v3 = vld [vmem:[%s4703_s1 + $0x3f0] sm:$0xff] }
 0x1b0   : > { %2855 = vmatprep.subr.msk.bf16.mxu1 %vm2854_vm14, %v2958_v39  ;;  %vm2856_vm1 = vmpackc.low %vm4458_vm12, %vm4447_vm8  ;;  %v1036_v17 = vunpack.c.l.b16 %v806_v9  ;;  %v1037_v18 = vunpack.c.h.b16 %v806_v9  ;;  %vm679_vm2 = vcmp.eq.bf16.partialorder %v471_v6, %v3063_v15  ;;  %v803_v19 = vsel %vm675_vm15, 65537, %v2957_v16 }
 0x1b1   : > { %2857 = vmatpush1.bf16.msk.msra.mxu1 %vm2856_vm1, %v2958_v39  ;;  %vm4480_vm3 = vcmp.ne.s32.totalorder %v1029_v11, 0  ;;  %v807_v23 = vsel %vm679_vm2, 65537, %v2957_v16  ;;  %v1030_v24 = vunpack.c.l.b16 %v803_v19  ;;  %v1031_v25 = vunpack.c.h.b16 %v803_v19 }
 0x1b2   : > { %vm1293_vm4 = vcmp.ne.s32.totalorder %v1037_v18, 0  ;;  %v1038_v28 = vunpack.c.l.b16 %v807_v23  ;;  %v1039_v29 = vunpack.c.h.b16 %v807_v23  ;;  %vm4488_vm5 = vcmp.ne.s32.totalorder %v1028_v10, 0  ;;  %v495_v10 = vld [vmem:[%s4703_s1 + $0x3f8] sm:$0xff] }
 0x1b3   : > { %vm2794_vm6 = vmpackc.low %vm1293_vm4, %vm4480_vm3  ;;  %vm4497_vm7 = vcmp.ne.s32.totalorder %v1031_v25, 0  ;;  %vm1292_vm8 = vcmp.ne.s32.totalorder %v1036_v17, 0  ;;  %vm4501_vm9 = vcmp.ne.s32.totalorder %v1030_v24, 0  ;;  %vm682_vm10 = vcmp.eq.bf16.partialorder %v474_v20, %v3061_v14 }
 0x1b4   : > { %2795 = vmatprep.subr.msk.bf16.mxu0 %vm2794_vm6, %v2958_v39  ;;  %vm1295_vm11 = vcmp.ne.s32.totalorder %v1039_v29, 0  ;;  %vm2796_vm12 = vmpackc.low %vm1292_vm8, %vm4488_vm5  ;;  %vm4512_vm13 = vcmp.ne.s32.totalorder %v1038_v28, 0  ;;  %vm686_vm14 = vcmp.eq.bf16.partialorder %v478_v26, %v3061_v14  ;;  %v810_v22 = vsel %vm682_vm10, 65537, %v2957_v16 }
 0x1b5   : > { %vm2858_vm15 = vmpackc.low %vm1295_vm11, %vm4497_vm7  ;;  %2797 = vmatpush1.bf16.msk.msra.mxu0 %vm2796_vm12, %v2958_v39  ;;  %v814_v36 = vsel %vm686_vm14, 65537, %v2957_v16  ;;  %v1044_v37 = vunpack.c.l.b16 %v810_v22  ;;  %v1045_v38 = vunpack.c.h.b16 %v810_v22  ;;  %vm683_vm1 = vcmp.eq.bf16.partialorder %v475_v31, %v3063_v15 }
 0x1b6   : > { %2859 = vmatprep.subr.msk.bf16.mxu1 %vm2858_vm15, %v2958_v39  ;;  %vm2860_vm2 = vmpackc.low %vm4512_vm13, %vm4501_vm9  ;;  %v1052_v40 = vunpack.c.l.b16 %v814_v36  ;;  %v1053_v41 = vunpack.c.h.b16 %v814_v36  ;;  %vm687_vm3 = vcmp.eq.bf16.partialorder %v479_v34, %v3063_v15  ;;  %v811_v42 = vsel %vm683_vm1, 65537, %v2957_v16 }
 0x1b7   : > { %2861 = vmatpush1.bf16.msk.msra.mxu1 %vm2860_vm2, %v2958_v39  ;;  %vm4534_vm4 = vcmp.ne.s32.totalorder %v1045_v38, 0  ;;  %v815_v13 = vsel %vm687_vm3, 65537, %v2957_v16  ;;  %v1046_v44 = vunpack.c.l.b16 %v811_v42  ;;  %v1047_v45 = vunpack.c.h.b16 %v811_v42 }
 0x1b8   : > { %vm1309_vm5 = vcmp.ne.s32.totalorder %v1053_v41, 0  ;;  %v1054_v47 = vunpack.c.l.b16 %v815_v13  ;;  %v1055_v48 = vunpack.c.h.b16 %v815_v13  ;;  %vm4542_vm6 = vcmp.ne.s32.totalorder %v1044_v37, 0 }
 0x1b9   : > { %vm2798_vm7 = vmpackc.low %vm1309_vm5, %vm4534_vm4  ;;  %vm4551_vm8 = vcmp.ne.s32.totalorder %v1047_v45, 0  ;;  %vm1308_vm9 = vcmp.ne.s32.totalorder %v1052_v40, 0  ;;  %vm4555_vm10 = vcmp.ne.s32.totalorder %v1046_v44, 0  ;;  %vm690_vm11 = vcmp.eq.bf16.partialorder %v482_v43, %v3061_v14 }
 0x1ba   : > { %2799 = vmatprep.subr.msk.bf16.mxu0 %vm2798_vm7, %v2958_v39  ;;  %vm1311_vm12 = vcmp.ne.s32.totalorder %v1055_v48, 0  ;;  %vm2800_vm13 = vmpackc.low %vm1308_vm9, %vm4542_vm6  ;;  %vm4566_vm14 = vcmp.ne.s32.totalorder %v1054_v47, 0  ;;  %vm694_vm15 = vcmp.eq.bf16.partialorder %v486_v46, %v3061_v14  ;;  %v818_v55 = vsel %vm690_vm11, 65537, %v2957_v16 }
 0x1bb   : > { %vm2862_vm1 = vmpackc.low %vm1311_vm12, %vm4551_vm8  ;;  %2801 = vmatpush1.bf16.msk.msra.mxu0 %vm2800_vm13, %v2958_v39  ;;  %v822_v56 = vsel %vm694_vm15, 65537, %v2957_v16  ;;  %v1060_v57 = vunpack.c.l.b16 %v818_v55  ;;  %v1061_v58 = vunpack.c.h.b16 %v818_v55  ;;  %vm691_vm2 = vcmp.eq.bf16.partialorder %v483_v50, %v3063_v15 }
 0x1bc   : > { %2863 = vmatprep.subr.msk.bf16.mxu1 %vm2862_vm1, %v2958_v39  ;;  %vm2864_vm3 = vmpackc.low %vm4566_vm14, %vm4555_vm10  ;;  %v1068_v59 = vunpack.c.l.b16 %v822_v56  ;;  %v1069_v60 = vunpack.c.h.b16 %v822_v56  ;;  %vm695_vm4 = vcmp.eq.bf16.partialorder %v487_v53, %v3063_v15  ;;  %v819_v61 = vsel %vm691_vm2, 65537, %v2957_v16 }
 0x1bd   : > { %2865 = vmatpush1.bf16.msk.msra.mxu1 %vm2864_vm3, %v2958_v39  ;;  %vm4588_vm5 = vcmp.ne.s32.totalorder %v1061_v58, 0  ;;  %v823_v0 = vsel %vm695_vm4, 65537, %v2957_v16  ;;  %v1062_v1 = vunpack.c.l.b16 %v819_v61  ;;  %v1063_v2 = vunpack.c.h.b16 %v819_v61 }
 0x1be   : > { %vm1325_vm6 = vcmp.ne.s32.totalorder %v1069_v60, 0  ;;  %v1070_v4 = vunpack.c.l.b16 %v823_v0  ;;  %v1071_v5 = vunpack.c.h.b16 %v823_v0  ;;  %vm4596_vm7 = vcmp.ne.s32.totalorder %v1060_v57, 0 }
 0x1bf   : > { %vm2802_vm8 = vmpackc.low %vm1325_vm6, %vm4588_vm5  ;;  %vm4605_vm9 = vcmp.ne.s32.totalorder %v1063_v2, 0  ;;  %vm1324_vm10 = vcmp.ne.s32.totalorder %v1068_v59, 0  ;;  %vm4609_vm11 = vcmp.ne.s32.totalorder %v1062_v1, 0  ;;  %vm698_vm12 = vcmp.eq.bf16.partialorder %v490_v62, %v3061_v14 }
 0x1c0   : > { %2803 = vmatprep.subr.msk.bf16.mxu0 %vm2802_vm8, %v2958_v39  ;;  %vm1327_vm13 = vcmp.ne.s32.totalorder %v1071_v5, 0  ;;  %vm2804_vm14 = vmpackc.low %vm1324_vm10, %vm4596_vm7  ;;  %vm4620_vm15 = vcmp.ne.s32.totalorder %v1070_v4, 0  ;;  %vm702_vm1 = vcmp.eq.bf16.partialorder %v494_v3, %v3061_v14  ;;  %v826_v17 = vsel %vm698_vm12, 65537, %v2957_v16 }
 0x1c1   : > { %vm2866_vm2 = vmpackc.low %vm1327_vm13, %vm4605_vm9  ;;  %2805 = vmatpush1.bf16.msk.msra.mxu0 %vm2804_vm14, %v2958_v39  ;;  %v830_v18 = vsel %vm702_vm1, 65537, %v2957_v16  ;;  %v1076_v19 = vunpack.c.l.b16 %v826_v17  ;;  %v1077_v20 = vunpack.c.h.b16 %v826_v17  ;;  %vm699_vm3 = vcmp.eq.bf16.partialorder %v491_v7, %v3063_v15 }
 0x1c2   : > { %2867 = vmatprep.subr.msk.bf16.mxu1 %vm2866_vm2, %v2958_v39  ;;  %vm2868_vm4 = vmpackc.low %vm4620_vm15, %vm4609_vm11  ;;  %v1084_v14 = vunpack.c.l.b16 %v830_v18  ;;  %v1085_v21 = vunpack.c.h.b16 %v830_v18  ;;  %vm703_vm5 = vcmp.eq.bf16.partialorder %v495_v10, %v3063_v15  ;;  %v827_v23 = vsel %vm699_vm3, 65537, %v2957_v16  ;;  %v2931_v15 = vld.sshfl [vmem:[%s4702_s0] sm:$0x33 pattern:$0x76325410] }
 0x1c3   : > { %2869 = vmatpush1.bf16.msk.msra.mxu1 %vm2868_vm4, %v2958_v39  ;;  %vm1333_vm6 = vcmp.ne.s32.totalorder %v1077_v20, 0  ;;  %v831_v24 = vsel %vm703_vm5, 65537, %v2957_v16  ;;  %v1078_v25 = vunpack.c.l.b16 %v827_v23  ;;  %v1079_v26 = vunpack.c.h.b16 %v827_v23 }
 0x1c4   : > { %vm1341_vm7 = vcmp.ne.s32.totalorder %v1085_v21, 0  ;;  %v1086_v28 = vunpack.c.l.b16 %v831_v24  ;;  %v1087_v29 = vunpack.c.h.b16 %v831_v24  ;;  %vm1332_vm8 = vcmp.ne.s32.totalorder %v1076_v19, 0 }
 0x1c5   : > { %vm2806_vm9 = vmpackc.low %vm1341_vm7, %vm1333_vm6  ;;  %vm1335_vm10 = vcmp.ne.s32.totalorder %v1079_v26, 0  ;;  %vm1340_vm11 = vcmp.ne.s32.totalorder %v1084_v14, 0  ;;  %vm1334_vm12 = vcmp.ne.s32.totalorder %v1078_v25, 0  ;;  %v2959_v16 = vmov 1966171168   ;;  %v2264_v26 = vld [vmem:[%s279_s29] sm:$0xff] }
 0x1c6   : > { %2807 = vmatprep.subr.msk.bf16.mxu0 %vm2806_vm9, %v2958_v39  ;;  %vm1343_vm13 = vcmp.ne.s32.totalorder %v1087_v29, 0  ;;  %vm2808_vm14 = vmpackc.low %vm1340_vm11, %vm1332_vm8  ;;  %vm1342_vm15 = vcmp.ne.s32.totalorder %v1086_v28, 0  ;;  %v2189_v30 = vunpack.c.l.s4 %v2959_v16  ;;  %vm2234_vm3 = vsmask.f32 512 }
 0x1c7   : > { %vm2870_vm1 = vmpackc.low %vm1343_vm13, %vm1335_vm10  ;;  %2809 = vmatpush1.bf16.msk.msra.mxu0 %vm2808_vm14, %v2958_v39  ;;  %vm2236_vm4 = vcmask 1041409   ;;  %vm2237_vm5 = vsmask.f32 1536  ;;  %vm2240_vm8 = vcmask 1042434   ;;  %vm2241_vm9 = vsmask.f32 2560 }
 0x1c8   : > { %2871 = vmatprep.subr.msk.bf16.mxu1 %vm2870_vm1, %v2958_v39  ;;  %vm2872_vm2 = vmpackc.low %vm1342_vm15, %vm1334_vm12  ;;  %v2190_v36 = vunpack.c.0.s8 %v2189_v30  ;;  %vm2244_vm12 = vcmask 1043459   ;;  %vm2245_vm13 = vsmask.f32 3584  ;;  %vm2248_vm1 = vcmask 1044484  }
 0x1c9   : > { %2873 = vmatpush1.bf16.msk.msra.mxu1 %vm2872_vm2, %v2958_v39  ;;  %vm2235_vm6 = vmand %vm285_vm0, %vm2234_vm3  ;;  %vm2249_vm2 = vsmask.f32 4608 }
 0x1ca   : > { %2111 = vmatmul.mubr.bf16.vlgmr.msra.gmra.mrb[4].mxu0 %v2931_v15  ;;  %v4648_v48 = vsub.s32 %v2190_v36, %v3035_v27  ;;  %vm2238_vm7 = vmand %vm2236_vm4, %vm2237_vm5  ;;  %vm2252_vm4 = vcmask 1045509   ;;  %vm2253_vm5 = vsmask.f32 5632 }
 0x1cb   : > { %vm2239_vm10 = vmor %vm2238_vm7, %vm2235_vm6 }
 0x1cc   : > { %2152 = vmatmul.mubr.bf16.vlgmr.msra.gmra.mrb[4].mxu1 %v2931_v15  ;;  %vm2242_vm11 = vmand %vm2240_vm8, %vm2241_vm9  ;;  %vm2256_vm8 = vcmask 1046534   ;;  %vm2257_vm9 = vsmask.f32 6656 }
 0x1cd   : > { %vm4655_vm14 = vmor %vm2242_vm11, %vm2239_vm10 }
 0x1ce   : > { %vm4659_vm15 = vmand %vm2244_vm12, %vm2245_vm13  ;;  %vm2260_vm12 = vcmask 1047559   ;;  %vm2261_vm13 = vsmask.f32 7680 }
 0x1cf   : > { %vm2247_vm0 = vmor %vm4659_vm15, %vm4655_vm14 }
 0x1d0   : > { %vm2250_vm3 = vmand %vm2248_vm1, %vm2249_vm2 }
 0x1d1   : > { %vm4673_vm6 = vmor %vm2250_vm3, %vm2247_vm0 }
 0x1d2   : > { %vm4677_vm7 = vmand %vm2252_vm4, %vm2253_vm5 }
 0x1d3   : > { %vm2255_vm10 = vmor %vm4677_vm7, %vm4673_vm6 }
 0x1d4   : > { %vm2258_vm11 = vmand %vm2256_vm8, %vm2257_vm9 }
 0x1d5   : > { %vm2259_vm14 = vmor %vm2258_vm11, %vm2255_vm10 }
 0x1d6   : > { %vm2262_vm15 = vmand %vm2260_vm12, %vm2261_vm13 }
 0x1d7   : > { %vm2263_vm1 = vmor %vm2262_vm15, %vm2259_vm14 }
 0x23e   : > { %v2030_v31 = vpop.f32.mrb[0].mxu0 }
 0x23f   : > { %v2884_v32 = vtrunc.f32 %v2030_v31  ;;  %v2071_v33 = vpop.f32.mrb[0].mxu1  ;;  %v2032_v34 = vpop.f32.mrb[1].mxu0 }
 0x240   : > { %v2888_v35 = vtrunc.f32 %v2071_v33  ;;  %v2886_v22 = vtrunc.f32 %v2032_v34  ;;  %v2073_v37 = vpop.f32.mrb[1].mxu1  ;;  %v2034_v38 = vpop.f32.mrb[2].mxu0 }
 0x241   : > { %v2885_v40 = vcvt.f32.s32 %v2884_v32  ;;  %v2890_v41 = vtrunc.f32 %v2073_v37  ;;  %v2075_v39 = vpop.f32.mrb[2].mxu1  ;;  %v2035_v42 = vpop.f32.mrb[3].mxu0 }
 0x242   : > { %v2889_v43 = vcvt.f32.s32 %v2888_v35  ;;  %v2887_v12 = vcvt.f32.s32 %v2886_v22  ;;  %v2076_v13 = vpop.f32.mrb[3].mxu1 }
 0x243   : > { %v2168_v44 = vpack.c.b16 %v2885_v40, %v2885_v40  ;;  %v2891_v45 = vcvt.f32.s32 %v2890_v41 }
 0x244   : > { %v2172_v46 = vpack.c.b16 %v2889_v43, %v2889_v43  ;;  %v2170_v47 = vpack.c.b16 %v2887_v12, %v2887_v12 }
 0x245   : > { %v2174_v49 = vpack.c.b16 %v2891_v45, %v2891_v45 }
 0x246   : > { %v2874_v50 = vpack.c.b8 %v2170_v47, %v2168_v44 }
 0x247   : > { %v2875_v51 = vpack.c.b8 %v2174_v49, %v2172_v46 }
 0x248   : > { %v2194_v52 = vrot.slane %v2874_v50, %v4648_v48 }
 0x249   : > { %v2201_v53 = vrot.slane %v2875_v51, %v4648_v48 }
 0x24b   : > { %v4652_v54 = vcombine.low %v2194_v52, %v2201_v53 }
 0x24d   : > { %v2224_v24 = vrot.slane %v4652_v54, %v4648_v48 }
 0x29d   : > { %v2112_v56 = vpop.f32.mrb[4].mxu0 }
 0x29e   : > { %v2892_v57 = vtrunc.f32 %v2112_v56  ;;  %v2114_v58 = vpop.f32.mrb[5].mxu0 }
 0x29f   : > { %v2153_v59 = vpop.f32.mrb[4].mxu1  ;;  %v2894_v60 = vtrunc.f32 %v2114_v58  ;;  %v2116_v61 = vpop.f32.mrb[6].mxu0 }
 0x2a0   : > { %v2893_v62 = vcvt.f32.s32 %v2892_v57  ;;  %v2896_v63 = vtrunc.f32 %v2153_v59  ;;  %v2155_v0 = vpop.f32.mrb[5].mxu1  ;;  %v2117_v1 = vpop.f32.mrb[7].mxu0 }
 0x2a1   : > { %v2895_v2 = vcvt.f32.s32 %v2894_v60  ;;  %v2898_v3 = vtrunc.f32 %v2155_v0  ;;  %v2157_v4 = vpop.f32.mrb[6].mxu1 }
 0x2a2   : > { %v2176_v6 = vpack.c.b16 %v2893_v62, %v2893_v62  ;;  %v2897_v7 = vcvt.f32.s32 %v2896_v63  ;;  %v2158_v8 = vpop.f32.mrb[7].mxu1 }
 0x2a3   : > { %v2178_v10 = vpack.c.b16 %v2895_v2, %v2895_v2  ;;  %v2899_v11 = vcvt.f32.s32 %v2898_v3 }
 0x2a4   : > { %v2180_v17 = vpack.c.b16 %v2897_v7, %v2897_v7 }
 0x2a5   : > { %v2876_v18 = vpack.c.b8 %v2178_v10, %v2176_v6  ;;  %v2182_v19 = vpack.c.b16 %v2899_v11, %v2899_v11 }
 0x2a7   : > { %v2208_v20 = vrot.slane %v2876_v18, %v4648_v48  ;;  %v2877_v14 = vpack.c.b8 %v2182_v19, %v2180_v17 }
 0x2a9   : > { %v2215_v21 = vrot.slane %v2877_v14, %v4648_v48 }
 0x2ab   : > { %v2217_v23 = vcombine.low %v2208_v20, %v2215_v21 }
 0x2ad   : > { %v2231_v25 = vrot.slane %v2217_v23, %v4648_v48 }
 0x2af   : > { %v2232_v28 = vcombine.low %v2224_v24, %v2231_v25 }
 0x2b1   : > { %v2265_v29 = vsel %vm2263_vm1, %v2232_v28, %v2264_v26 }
 0x2b2   : > { %2266 = vst [vmem:[%s279_s29] sm:$0xff] %v2265_v29 }
 0x2b3 PF: > { %s15_s20 = sadd.s32 1, %s2954_s20   ;;  %s4988_s18 = smov %s2950_s19 }
 0x2b4   : > { %p12_p6 = scmp.ge.s32.totalorder %s15_s20, 4   ;;  %s4989_s19 = smov %s4991_s21 }
 0x2b6   :  { %14 = sbr.rel (!%p12_p6) target bundleno = 2 (0x2), region = 76 }

</bundles_post_ra>
